<compile_context>
chip_gen: v7x
topology: tpu7x:2x2x1
jax: 0.10.0
libtpu: 0.0.40
codegen_flags: <defaults>
</compile_context>

<pallas_src>
import math
import functools

import jax
import jax.numpy as jnp
from jax.experimental import pallas as pl
from jax.experimental.pallas import tpu as pltpu


# --------------------------------------------------------------------------
# in-kernel helpers
# --------------------------------------------------------------------------
def _erf(x, approx_recip):
    # Abramowitz & Stegun 7.1.26 rational approximation (max abs err ~1.5e-7),
    # matching torch.erf / exact F.gelu to f32 precision with ops guaranteed to
    # lower on the TPU VPU/EUP.  The divide goes to the EUP via pl.reciprocal.
    a1, a2, a3, a4, a5 = 0.254829592, -0.284496736, 1.421413741, -1.453152027, 1.061405429
    p = 0.3275911
    sgn = jnp.where(x >= 0.0, 1.0, -1.0)
    ax = jnp.abs(x)
    t = pl.reciprocal(1.0 + p * ax, approx=approx_recip)
    poly = t * (a1 + t * (a2 + t * (a3 + t * (a4 + t * a5))))
    return sgn * (1.0 - poly * jnp.exp(-ax * ax))


def _gelu(x, approx_recip):
    # exact (erf-based) GELU, matching torch.nn.functional.gelu's default
    return 0.5 * x * (1.0 + _erf(x * (1.0 / math.sqrt(2.0)), approx_recip))


def _layer_norm(x, gamma, beta, eps=1e-6):
    mu = jnp.mean(x, axis=-1, keepdims=True)
    var = jnp.mean((x - mu) ** 2, axis=-1, keepdims=True)
    return (x - mu) * jax.lax.rsqrt(var + eps) * gamma + beta


# --------------------------------------------------------------------------
# kernel: one batch TILE (Bt examples) per grid step
# --------------------------------------------------------------------------
def _decoder_layer_kernel(
    q_ref, k_ref, v_ref, bias_ref,
    wq_ref, wk_ref, wv_ref, wfc_ref, bfc_ref, ln1g_ref, ln1b_ref,
    w1_ref, b1_ref, w2_ref, b2_ref, ln2g_ref, ln2b_ref,
    out_ref, attn_ref,
    *, n_head, d_k, d_v, compute_dtype, approx_recip,
):
    bt, lq, dm = q_ref.shape
    lk = k_ref.shape[1]
    cd = compute_dtype

    # Flatten the batch tile into matmul rows (leading-dim reshape only; the
    # minor (lane) dim is untouched, so this is layout-preserving when Lq/Lk
    # are sublane-aligned, e.g. multiples of 8).
    q_in = q_ref[...].astype(jnp.float32).reshape(bt * lq, dm)   # (Bt*Lq, D)
    k_in = k_ref[...].astype(jnp.float32).reshape(bt * lk, dm)   # (Bt*Lk, D)
    v_in = v_ref[...].astype(jnp.float32).reshape(bt * lk, dm)   # (Bt*Lk, D)
    bias = bias_ref[...]                                         # (Bt, Lq, Lk) additive (-1e9 on masked)

    residual = q_in

    # ---- MultiHeadAttention (normalize_before=True: pre-norm on Q only) ----
    qn = _layer_norm(q_in, ln1g_ref[...], ln1b_ref[...])

    # Single big projections over all Bt*L rows (MXU-friendly M).
    qp = jnp.dot(qn.astype(cd),   wq_ref[...], preferred_element_type=jnp.float32)  # (Bt*Lq, H*dk)
    kp = jnp.dot(k_in.astype(cd), wk_ref[...], preferred_element_type=jnp.float32)  # (Bt*Lk, H*dk)
    vp = jnp.dot(v_in.astype(cd), wv_ref[...], preferred_element_type=jnp.float32)  # (Bt*Lk, H*dv)

    qp3 = qp.reshape(bt, lq, n_head * d_k)
    kp3 = kp.reshape(bt, lk, n_head * d_k)
    vp3 = vp.reshape(bt, lk, n_head * d_v)

    inv_temp = jnp.float32(1.0 / math.sqrt(d_k))
    wfc = wfc_ref[...]                                           # (H*dv, D), compute dtype

    # Accumulate the (already output-projected) attention result per head.
    o = jnp.zeros((bt * lq, dm), jnp.float32)

    # Static unroll over heads (small H); the Bt batch is handled by batched
    # dots, so each MXU call sees all Bt examples at once.
    for h in range(n_head):
        qh = qp3[:, :, h * d_k:(h + 1) * d_k]                    # (Bt, Lq, dk)
        kh = kp3[:, :, h * d_k:(h + 1) * d_k]                    # (Bt, Lk, dk)
        vh = vp3[:, :, h * d_v:(h + 1) * d_v]                    # (Bt, Lk, dv)

        s = jnp.einsum("bqd,bkd->bqk", qh.astype(cd), kh.astype(cd),
                       preferred_element_type=jnp.float32)       # (Bt, Lq, Lk)
        s = s * inv_temp + bias                                  # additive mask bias
        s = s - jnp.max(s, axis=-1, keepdims=True)
        e = jnp.exp(s)
        attn = e * pl.reciprocal(jnp.sum(e, axis=-1, keepdims=True),
                                 approx=approx_recip)            # softmax (dropout = id)
        attn_ref[:, h, :, :] = attn.astype(attn_ref.dtype)       # one block-slice store per head

        ctx = jnp.einsum("bqk,bkd->bqd", attn.astype(cd), vh.astype(cd),
                         preferred_element_type=jnp.float32)     # (Bt, Lq, dv)
        # Fused per-head output projection; avoids concatenating head outputs.
        o = o + jnp.dot(ctx.reshape(bt * lq, d_v).astype(cd),
                        wfc[h * d_v:(h + 1) * d_v, :],
                        preferred_element_type=jnp.float32)      # (Bt*Lq, D)

    x = o + bfc_ref[...] + residual                              # fc bias + residual (dropout = id)

    # ---- PositionwiseFeedForward (pre-norm; Pyraformer applies GELU after BOTH linears) ----
    res2 = x
    xn = _layer_norm(x, ln2g_ref[...], ln2b_ref[...])
    h1 = _gelu(jnp.dot(xn.astype(cd), w1_ref[...], preferred_element_type=jnp.float32)
               + b1_ref[...], approx_recip)
    h2 = _gelu(jnp.dot(h1.astype(cd), w2_ref[...], preferred_element_type=jnp.float32)
               + b2_ref[...], approx_recip)
    out_ref[...] = (h2 + res2).reshape(bt, lq, dm).astype(out_ref.dtype)


# --------------------------------------------------------------------------
# wrapper
# --------------------------------------------------------------------------
def decoder_layer(Q, K, V, mask, params, *, n_head, d_k, d_v,
                  compute_dtype=jnp.bfloat16, batch_block=None):
    """mask: (B, Lq, Lk), 1.0 == masked position (same convention as the module).

    compute_dtype: dtype fed to the MXU (bf16 recommended on v6e/v7x); all
    accumulation / LayerNorm / softmax / GELU stays in f32.
    """
    B, Lq, D = Q.shape
    Lk = K.shape[1]
    d_inner = params["w1"].shape[1]

    cd = jnp.dtype(compute_dtype)
    approx = cd != jnp.dtype(jnp.float32)      # approx EUP reciprocal only in the fast path

    # Additive attention bias: 0 where visible, -1e9 where masked (replaces
    # compare+select in the kernel hot path).  NOTE: for rows that are FULLY
    # masked this differs from masked_fill (softmax of raw scores vs uniform);
    # Pyraformer masks never fully mask a query row.
    bias = mask.astype(jnp.float32) * jnp.float32(-1e9)

    # ---- batch tile selection: aim for >= 128 matmul rows per grid step, but
    # prefer >= 2 grid steps (v7x has 2 TensorCores) when that keeps >=128 rows.
    if batch_block is None:
        bt = min(B, max(1, -(-128 // Lq)))
        while B % bt:
            bt -= 1
        if B // bt < 2:
            for cand in range(bt - 1, 0, -1):
                if B % cand == 0 and cand * Lq >= 128:
                    bt = cand
                    break
    else:
        bt = batch_block
    assert B % bt == 0, "batch_block must divide the batch size"
    grid = (B // bt,)

    # Big matmul weights in the MXU compute dtype (halves weight DMA bytes in bf16).
    big_w = {k: params[k].astype(cd) for k in ("wq", "wk", "wv", "wfc", "w1", "w2")}
    small_p = {k: params[k].astype(jnp.float32)
               for k in ("bfc", "ln1_g", "ln1_b", "b1", "b2", "ln2_g", "ln2_b")}

    kernel = functools.partial(_decoder_layer_kernel, n_head=n_head, d_k=d_k,
                               d_v=d_v, compute_dtype=cd, approx_recip=approx)

    def tile_spec(block_shape):
        n_rest = len(block_shape) - 1
        return pl.BlockSpec(block_shape, lambda b, _n=n_rest: (b,) + (0,) * _n)

    def full_spec(shape):
        n = len(shape)
        return pl.BlockSpec(shape, lambda b, _n=n: (0,) * _n)

    in_specs = [
        tile_spec((bt, Lq, D)), tile_spec((bt, Lk, D)), tile_spec((bt, Lk, D)),
        tile_spec((bt, Lq, Lk)),
        full_spec(big_w["wq"].shape), full_spec(big_w["wk"].shape),
        full_spec(big_w["wv"].shape), full_spec(big_w["wfc"].shape),
        full_spec(small_p["bfc"].shape), full_spec(small_p["ln1_g"].shape),
        full_spec(small_p["ln1_b"].shape), full_spec(big_w["w1"].shape),
        full_spec(small_p["b1"].shape), full_spec(big_w["w2"].shape),
        full_spec(small_p["b2"].shape), full_spec(small_p["ln2_g"].shape),
        full_spec(small_p["ln2_b"].shape),
    ]
    out_specs = [
        tile_spec((bt, Lq, D)),
        tile_spec((bt, n_head, Lq, Lk)),
    ]
    out_shapes = (
        jax.ShapeDtypeStruct((B, Lq, D), jnp.float32),
        jax.ShapeDtypeStruct((B, n_head, Lq, Lk), jnp.float32),
    )

    # ---- cost estimate (lets XLA schedule the surrounding graph correctly) ----
    flops = 2 * B * (
        Lq * D * n_head * d_k + Lk * D * n_head * d_k + Lk * D * n_head * d_v
        + n_head * Lq * Lk * (d_k + d_v) + Lq * n_head * d_v * D
        + 2 * Lq * D * d_inner)
    transcendentals = B * (n_head * Lq * Lk + Lq * (d_inner + D) + 4 * Lq)
    w_bytes = sum(int(w.size) * w.dtype.itemsize for w in big_w.values()) \
        + sum(int(p.size) * 4 for p in small_p.values())
    io_bytes = 4 * (Q.size + K.size + V.size + bias.size
                    + B * Lq * D + B * n_head * Lq * Lk)
    cost = pl.CostEstimate(flops=int(flops), transcendentals=int(transcendentals),
                           bytes_accessed=int(io_bytes + w_bytes))

    # ---- explicit VMEM budget (blocks are double-buffered); keep <= 64 MiB so
    # the same setting is valid on v7x (64 MiB physical per TC).
    block_bytes = 4 * (bt * Lq * D + 2 * bt * Lk * D + bt * Lq * Lk
                       + bt * Lq * D + bt * n_head * Lq * Lk) + w_bytes
    vmem_limit = int(min(64 * 1024 * 1024, max(16 * 1024 * 1024, 4 * block_bytes)))

    fn = pl.pallas_call(
        kernel,
        out_shape=out_shapes,
        grid_spec=pltpu.PrefetchScalarGridSpec(
            num_scalar_prefetch=0,
            grid=grid,
            in_specs=in_specs,
            out_specs=out_specs,
        ),
        compiler_params=pltpu.CompilerParams(
            dimension_semantics=("parallel",),
            vmem_limit_bytes=vmem_limit),
        cost_estimate=cost,
    )
    return fn(Q, K, V, bias,
              big_w["wq"], big_w["wk"], big_w["wv"], big_w["wfc"],
              small_p["bfc"], small_p["ln1_g"], small_p["ln1_b"],
              big_w["w1"], small_p["b1"], big_w["w2"], small_p["b2"],
              small_p["ln2_g"], small_p["ln2_b"])


# --------------------------------------------------------------------------
# pure-JAX reference (mirrors the PyTorch forward, eval mode, full f32)
# --------------------------------------------------------------------------
def decoder_layer_ref(Q, K, V, mask, params, *, n_head, d_k, d_v):
    def ln(x, g, b):
        mu = jnp.mean(x, -1, keepdims=True)
        var = jnp.mean((x - mu) ** 2, -1, keepdims=True)
        return (x - mu) / jnp.sqrt(var + 1e-6) * g + b

    def gelu(x):
        return 0.5 * x * (1.0 + jax.scipy.special.erf(x / math.sqrt(2.0)))

    B, Lq, D = Q.shape
    Lk = K.shape[1]
    residual = Q
    qn = ln(Q, params["ln1_g"][0], params["ln1_b"][0])
    qp = (qn @ params["wq"]).reshape(B, Lq, n_head, d_k).transpose(0, 2, 1, 3)
    kp = (K @ params["wk"]).reshape(B, Lk, n_head, d_k).transpose(0, 2, 1, 3)
    vp = (V @ params["wv"]).reshape(B, Lk, n_head, d_v).transpose(0, 2, 1, 3)
    scores = jnp.einsum("bhqd,bhkd->bhqk", qp / math.sqrt(d_k), kp)
    scores = jnp.where(mask[:, None] > 0.5, -1e9, scores)
    attn = jax.nn.softmax(scores, axis=-1)
    o = jnp.einsum("bhqk,bhkd->bhqd", attn, vp).transpose(0, 2, 1, 3).reshape(B, Lq, n_head * d_v)
    x = o @ params["wfc"] + params["bfc"][0] + residual
    res2 = x
    xn = ln(x, params["ln2_g"][0], params["ln2_b"][0])
    h1 = gelu(xn @ params["w1"] + params["b1"][0])
    h2 = gelu(h1 @ params["w2"] + params["b2"][0])
    return h2 + res2, attn


# --------------------------------------------------------------------------
if __name__ == "__main__":
    B, Lq, Lk = 2, 8, 16
    d_model, d_inner, n_head, d_k, d_v = 32, 64, 4, 8, 8

    key = jax.random.PRNGKey(0)
    keys = jax.random.split(key, 16)

    def xavier(k, fan_in, fan_out):
        bound = math.sqrt(6.0 / (fan_in + fan_out))
        return jax.random.uniform(k, (fan_in, fan_out), jnp.float32, -bound, bound)

    params = dict(
        wq=xavier(keys[0], d_model, n_head * d_k),
        wk=xavier(keys[1], d_model, n_head * d_k),
        wv=xavier(keys[2], d_model, n_head * d_v),
        wfc=xavier(keys[3], n_head * d_v, d_model),
        bfc=jax.random.uniform(keys[4], (1, d_model), jnp.float32, -0.1, 0.1),
        ln1_g=jnp.ones((1, d_model), jnp.float32),
        ln1_b=jnp.zeros((1, d_model), jnp.float32),
        w1=xavier(keys[5], d_model, d_inner),
        b1=jax.random.uniform(keys[6], (1, d_inner), jnp.float32, -0.1, 0.1),
        w2=xavier(keys[7], d_inner, d_model),
        b2=jax.random.uniform(keys[8], (1, d_model), jnp.float32, -0.1, 0.1),
        ln2_g=jnp.ones((1, d_model), jnp.float32),
        ln2_b=jnp.zeros((1, d_model), jnp.float32),
    )

    Q = jax.random.normal(keys[9], (B, Lq, d_model), jnp.float32)
    K = jax.random.normal(keys[10], (B, Lk, d_model), jnp.float32)
    V = jax.random.normal(keys[11], (B, Lk, d_model), jnp.float32)

    # boolean-style self-attention mask (1.0 == masked), causal-with-prefix
    qi = jnp.arange(Lq)[:, None]
    kj = jnp.arange(Lk)[None, :]
    mask = jnp.broadcast_to((kj > (qi + (Lk - Lq))).astype(jnp.float32), (B, Lq, Lk))

    ref_out, ref_attn = decoder_layer_ref(Q, K, V, mask, params,
                                          n_head=n_head, d_k=d_k, d_v=d_v)

    # 1) precise path (f32 MXU, exact reciprocal) — tight correctness check
    out32, attn32 = decoder_layer(Q, K, V, mask, params, n_head=n_head, d_k=d_k,
                                  d_v=d_v, compute_dtype=jnp.float32)
    jax.block_until_ready((out32, attn32))
    assert out32.shape == (B, Lq, d_model) and attn32.shape == (B, n_head, Lq, Lk)
    assert jnp.allclose(attn32, ref_attn, atol=2e-5, rtol=2e-5), "attention mismatch (f32)"
    assert jnp.allclose(out32, ref_out, atol=2e-4, rtol=2e-4), "output mismatch (f32)"

    # 2) fast path (bf16 MXU operands + approx EUP reciprocal; v6e/v7x recommendation)
    out_bf, attn_bf = decoder_layer(Q, K, V, mask, params, n_head=n_head,
                                    d_k=d_k, d_v=d_v)   # compute_dtype=bf16 default
    jax.block_until_ready((out_bf, attn_bf))
    assert jnp.allclose(attn_bf, ref_attn, atol=2e-2, rtol=2e-2), "attention mismatch (bf16)"
    assert jnp.allclose(out_bf, ref_out, atol=7.5e-2, rtol=7.5e-2), "output mismatch (bf16)"

    print("KERNEL_OK")
</pallas_src>

<mosaic_0001>
module attributes {stable_mosaic.version = 11 : i64} {
  func.func @_decoder_layer_kernel(%arg0: i32, %arg1: memref<2x8x32xf32, #tpu.memory_space<vmem>>, %arg2: memref<2x16x32xf32, #tpu.memory_space<vmem>>, %arg3: memref<2x16x32xf32, #tpu.memory_space<vmem>>, %arg4: memref<2x8x16xf32, #tpu.memory_space<vmem>>, %arg5: memref<32x32xf32, #tpu.memory_space<vmem>>, %arg6: memref<32x32xf32, #tpu.memory_space<vmem>>, %arg7: memref<32x32xf32, #tpu.memory_space<vmem>>, %arg8: memref<32x32xf32, #tpu.memory_space<vmem>>, %arg9: memref<1x32xf32, #tpu.memory_space<vmem>>, %arg10: memref<1x32xf32, #tpu.memory_space<vmem>>, %arg11: memref<1x32xf32, #tpu.memory_space<vmem>>, %arg12: memref<32x64xf32, #tpu.memory_space<vmem>>, %arg13: memref<1x64xf32, #tpu.memory_space<vmem>>, %arg14: memref<64x32xf32, #tpu.memory_space<vmem>>, %arg15: memref<1x32xf32, #tpu.memory_space<vmem>>, %arg16: memref<1x32xf32, #tpu.memory_space<vmem>>, %arg17: memref<1x32xf32, #tpu.memory_space<vmem>>, %arg18: memref<2x8x32xf32, #tpu.memory_space<vmem>>, %arg19: memref<2x4x8x16xf32, #tpu.memory_space<vmem>>) attributes {dimension_semantics = [#tpu.dimension_semantics<parallel>], iteration_bounds = array<i64: 1>, scalar_prefetch = 0 : i64, scratch_operands = 0 : i64, tpu.core_type = #tpu.core_type<tc>, window_params = [{transform_indices = @transform_0, window_bounds = array<i64: 2, 8, 32>}, {transform_indices = @transform_1, window_bounds = array<i64: 2, 16, 32>}, {transform_indices = @transform_2, window_bounds = array<i64: 2, 16, 32>}, {transform_indices = @transform_3, window_bounds = array<i64: 2, 8, 16>}, {pipeline_mode = #tpu.pipeline_mode<synchronous>, transform_indices = @transform_4, window_bounds = array<i64: 32, 32>}, {pipeline_mode = #tpu.pipeline_mode<synchronous>, transform_indices = @transform_5, window_bounds = array<i64: 32, 32>}, {pipeline_mode = #tpu.pipeline_mode<synchronous>, transform_indices = @transform_6, window_bounds = array<i64: 32, 32>}, {pipeline_mode = #tpu.pipeline_mode<synchronous>, transform_indices = @transform_7, window_bounds = array<i64: 32, 32>}, {pipeline_mode = #tpu.pipeline_mode<synchronous>, transform_indices = @transform_8, window_bounds = array<i64: 1, 32>}, {pipeline_mode = #tpu.pipeline_mode<synchronous>, transform_indices = @transform_9, window_bounds = array<i64: 1, 32>}, {pipeline_mode = #tpu.pipeline_mode<synchronous>, transform_indices = @transform_10, window_bounds = array<i64: 1, 32>}, {pipeline_mode = #tpu.pipeline_mode<synchronous>, transform_indices = @transform_11, window_bounds = array<i64: 32, 64>}, {pipeline_mode = #tpu.pipeline_mode<synchronous>, transform_indices = @transform_12, window_bounds = array<i64: 1, 64>}, {pipeline_mode = #tpu.pipeline_mode<synchronous>, transform_indices = @transform_13, window_bounds = array<i64: 64, 32>}, {pipeline_mode = #tpu.pipeline_mode<synchronous>, transform_indices = @transform_14, window_bounds = array<i64: 1, 32>}, {pipeline_mode = #tpu.pipeline_mode<synchronous>, transform_indices = @transform_15, window_bounds = array<i64: 1, 32>}, {pipeline_mode = #tpu.pipeline_mode<synchronous>, transform_indices = @transform_16, window_bounds = array<i64: 1, 32>}, {transform_indices = @transform_17, window_bounds = array<i64: 2, 8, 32>}, {transform_indices = @transform_18, window_bounds = array<i64: 2, 4, 8, 16>}]} {
    %c0 = arith.constant 0 : index
    %c0_0 = arith.constant 0 : index
    %c0_1 = arith.constant 0 : index
    %0 = vector.load %arg1[%c0, %c0_0, %c0_1] : memref<2x8x32xf32, #tpu.memory_space<vmem>>, vector<2x8x32xf32>
    %1 = vector.shape_cast %0 : vector<2x8x32xf32> to vector<16x32xf32>
    %c0_2 = arith.constant 0 : index
    %c0_3 = arith.constant 0 : index
    %c0_4 = arith.constant 0 : index
    %2 = vector.load %arg2[%c0_2, %c0_3, %c0_4] : memref<2x16x32xf32, #tpu.memory_space<vmem>>, vector<2x16x32xf32>
    %3 = vector.shape_cast %2 : vector<2x16x32xf32> to vector<32x32xf32>
    %c0_5 = arith.constant 0 : index
    %c0_6 = arith.constant 0 : index
    %c0_7 = arith.constant 0 : index
    %4 = vector.load %arg3[%c0_5, %c0_6, %c0_7] : memref<2x16x32xf32, #tpu.memory_space<vmem>>, vector<2x16x32xf32>
    %5 = vector.shape_cast %4 : vector<2x16x32xf32> to vector<32x32xf32>
    %c0_8 = arith.constant 0 : index
    %c0_9 = arith.constant 0 : index
    %c0_10 = arith.constant 0 : index
    %6 = vector.load %arg4[%c0_8, %c0_9, %c0_10] : memref<2x8x16xf32, #tpu.memory_space<vmem>>, vector<2x8x16xf32>
    %c0_11 = arith.constant 0 : index
    %c0_12 = arith.constant 0 : index
    %7 = vector.load %arg10[%c0_11, %c0_12] : memref<1x32xf32, #tpu.memory_space<vmem>>, vector<1x32xf32>
    %c0_13 = arith.constant 0 : index
    %c0_14 = arith.constant 0 : index
    %8 = vector.load %arg11[%c0_13, %c0_14] : memref<1x32xf32, #tpu.memory_space<vmem>>, vector<1x32xf32>
    %cst = arith.constant dense<0.000000e+00> : vector<16xf32>
    %9 = vector.multi_reduction <add>, %1, %cst [1] : vector<16x32xf32> to vector<16xf32>
    %10 = vector.shape_cast %9 : vector<16xf32> to vector<16x1xf32>
    %cst_15 = arith.constant 3.200000e+01 : f32
    %11 = vector.broadcast %cst_15 : f32 to vector<16x1xf32>
    %12 = arith.divf %10, %11 : vector<16x1xf32>
    %13 = vector.broadcast %12 : vector<16x1xf32> to vector<16x32xf32>
    %14 = arith.subf %1, %13 : vector<16x32xf32>
    %15 = arith.mulf %14, %14 : vector<16x32xf32>
    %cst_16 = arith.constant dense<0.000000e+00> : vector<16xf32>
    %16 = vector.multi_reduction <add>, %15, %cst_16 [1] : vector<16x32xf32> to vector<16xf32>
    %17 = vector.shape_cast %16 : vector<16xf32> to vector<16x1xf32>
    %cst_17 = arith.constant 3.200000e+01 : f32
    %18 = vector.broadcast %cst_17 : f32 to vector<16x1xf32>
    %19 = arith.divf %17, %18 : vector<16x1xf32>
    %20 = vector.broadcast %12 : vector<16x1xf32> to vector<16x32xf32>
    %21 = arith.subf %1, %20 : vector<16x32xf32>
    %cst_18 = arith.constant 9.99999997E-7 : f32
    %22 = vector.broadcast %cst_18 : f32 to vector<16x1xf32>
    %23 = arith.addf %19, %22 : vector<16x1xf32>
    %24 = math.rsqrt %23 : vector<16x1xf32>
    %25 = vector.broadcast %24 : vector<16x1xf32> to vector<16x32xf32>
    %26 = arith.mulf %21, %25 : vector<16x32xf32>
    %27 = vector.broadcast %7 : vector<1x32xf32> to vector<16x32xf32>
    %28 = arith.mulf %26, %27 : vector<16x32xf32>
    %29 = vector.broadcast %8 : vector<1x32xf32> to vector<16x32xf32>
    %30 = arith.addf %28, %29 : vector<16x32xf32>
    %c0_19 = arith.constant 0 : index
    %c0_20 = arith.constant 0 : index
    %31 = vector.load %arg5[%c0_19, %c0_20] : memref<32x32xf32, #tpu.memory_space<vmem>>, vector<32x32xf32>
    %cst_21 = arith.constant dense<0.000000e+00> : vector<16x32xf32>
    %32 = tpu.matmul %30, %31, %cst_21 {dimension_numbers = #tpu.dot_dimension_numbers<[1], [0], [0], [1], [0, 0, 1, 1], [], []>} : vector<16x32xf32>, vector<32x32xf32>, vector<16x32xf32> -> vector<16x32xf32>
    %c0_22 = arith.constant 0 : index
    %c0_23 = arith.constant 0 : index
    %33 = vector.load %arg6[%c0_22, %c0_23] : memref<32x32xf32, #tpu.memory_space<vmem>>, vector<32x32xf32>
    %cst_24 = arith.constant dense<0.000000e+00> : vector<32x32xf32>
    %34 = tpu.matmul %3, %33, %cst_24 {dimension_numbers = #tpu.dot_dimension_numbers<[1], [0], [0], [1], [0, 0, 1, 1], [], []>} : vector<32x32xf32>, vector<32x32xf32>, vector<32x32xf32> -> vector<32x32xf32>
    %c0_25 = arith.constant 0 : index
    %c0_26 = arith.constant 0 : index
    %35 = vector.load %arg7[%c0_25, %c0_26] : memref<32x32xf32, #tpu.memory_space<vmem>>, vector<32x32xf32>
    %cst_27 = arith.constant dense<0.000000e+00> : vector<32x32xf32>
    %36 = tpu.matmul %5, %35, %cst_27 {dimension_numbers = #tpu.dot_dimension_numbers<[1], [0], [0], [1], [0, 0, 1, 1], [], []>} : vector<32x32xf32>, vector<32x32xf32>, vector<32x32xf32> -> vector<32x32xf32>
    %37 = vector.shape_cast %32 : vector<16x32xf32> to vector<2x8x32xf32>
    %38 = vector.shape_cast %34 : vector<32x32xf32> to vector<2x16x32xf32>
    %39 = vector.shape_cast %36 : vector<32x32xf32> to vector<2x16x32xf32>
    %c0_28 = arith.constant 0 : index
    %c0_29 = arith.constant 0 : index
    %40 = vector.load %arg8[%c0_28, %c0_29] : memref<32x32xf32, #tpu.memory_space<vmem>>, vector<32x32xf32>
    %cst_30 = arith.constant 0.000000e+00 : f32
    %41 = vector.broadcast %cst_30 : f32 to vector<16x32xf32>
    %42 = vector.extract_strided_slice %37 {offsets = [0, 0, 0], sizes = [2, 8, 8], strides = [1, 1, 1]} : vector<2x8x32xf32> to vector<2x8x8xf32>
    %43 = vector.extract_strided_slice %38 {offsets = [0, 0, 0], sizes = [2, 16, 8], strides = [1, 1, 1]} : vector<2x16x32xf32> to vector<2x16x8xf32>
    %44 = vector.extract_strided_slice %39 {offsets = [0, 0, 0], sizes = [2, 16, 8], strides = [1, 1, 1]} : vector<2x16x32xf32> to vector<2x16x8xf32>
    "tpu.trace_start"() <{level = 10 : i32, message = "bqd,bkd->bqk"}> : () -> ()
    %cst_31 = arith.constant dense<0.000000e+00> : vector<2x8x16xf32>
    %45 = tpu.matmul %42, %43, %cst_31 {dimension_numbers = #tpu.dot_dimension_numbers<[2], [2], [1], [1], [0, 0, 0, 1, 1, 1], [0], [0]>} : vector<2x8x8xf32>, vector<2x16x8xf32>, vector<2x8x16xf32> -> vector<2x8x16xf32>
    "tpu.trace_stop"() : () -> ()
    %cst_32 = arith.constant 0.353553385 : f32
    %46 = vector.broadcast %cst_32 : f32 to vector<2x8x16xf32>
    %47 = arith.mulf %45, %46 : vector<2x8x16xf32>
    %48 = arith.addf %47, %6 : vector<2x8x16xf32>
    %cst_33 = arith.constant dense<0xFF800000> : vector<2x8xf32>
    %49 = vector.multi_reduction <maximumf>, %48, %cst_33 [2] : vector<2x8x16xf32> to vector<2x8xf32>
    %50 = vector.shape_cast %49 : vector<2x8xf32> to vector<2x8x1xf32>
    %51 = vector.broadcast %50 : vector<2x8x1xf32> to vector<2x8x16xf32>
    %52 = arith.subf %48, %51 : vector<2x8x16xf32>
    %53 = math.exp %52 : vector<2x8x16xf32>
    %cst_34 = arith.constant dense<0.000000e+00> : vector<2x8xf32>
    %54 = vector.multi_reduction <add>, %53, %cst_34 [2] : vector<2x8x16xf32> to vector<2x8xf32>
    %55 = vector.shape_cast %54 : vector<2x8xf32> to vector<2x8x1xf32>
    %56 = tpu.reciprocal %55 : vector<2x8x1xf32> -> vector<2x8x1xf32>
    %57 = vector.broadcast %56 : vector<2x8x1xf32> to vector<2x8x16xf32>
    %58 = arith.mulf %53, %57 : vector<2x8x16xf32>
    %c0_35 = arith.constant 0 : index
    %c0_36 = arith.constant 0 : index
    %c0_37 = arith.constant 0 : index
    %c0_38 = arith.constant 0 : index
    %59 = vector.load %arg19[%c0_35, %c0_36, %c0_37, %c0_38] : memref<2x4x8x16xf32, #tpu.memory_space<vmem>>, vector<2x1x8x16xf32>
    %60 = vector.shape_cast %59 : vector<2x1x8x16xf32> to vector<2x8x16xf32>
    %61 = vector.shape_cast %58 : vector<2x8x16xf32> to vector<2x1x8x16xf32>
    tpu.vector_store %arg19[%c0_35, %c0_36, %c0_37, %c0_38], %61 {strides = array<i32>} : memref<2x4x8x16xf32, #tpu.memory_space<vmem>>, vector<2x1x8x16xf32>,
    "tpu.trace_start"() <{level = 10 : i32, message = "bqk,bkd->bqd"}> : () -> ()
    %cst_39 = arith.constant dense<0.000000e+00> : vector<2x8x8xf32>
    %62 = tpu.matmul %58, %44, %cst_39 {dimension_numbers = #tpu.dot_dimension_numbers<[2], [1], [1], [2], [0, 0, 0, 1, 1, 2], [0], [0]>} : vector<2x8x16xf32>, vector<2x16x8xf32>, vector<2x8x8xf32> -> vector<2x8x8xf32>
    "tpu.trace_stop"() : () -> ()
    %63 = vector.shape_cast %62 : vector<2x8x8xf32> to vector<16x8xf32>
    %64 = vector.extract_strided_slice %40 {offsets = [0, 0], sizes = [8, 32], strides = [1, 1]} : vector<32x32xf32> to vector<8x32xf32>
    %cst_40 = arith.constant dense<0.000000e+00> : vector<16x32xf32>
    %65 = tpu.matmul %63, %64, %cst_40 {dimension_numbers = #tpu.dot_dimension_numbers<[1], [0], [0], [1], [0, 0, 1, 1], [], []>} : vector<16x8xf32>, vector<8x32xf32>, vector<16x32xf32> -> vector<16x32xf32>
    %66 = arith.addf %41, %65 : vector<16x32xf32>
    %67 = vector.extract_strided_slice %37 {offsets = [0, 0, 8], sizes = [2, 8, 8], strides = [1, 1, 1]} : vector<2x8x32xf32> to vector<2x8x8xf32>
    %68 = vector.extract_strided_slice %38 {offsets = [0, 0, 8], sizes = [2, 16, 8], strides = [1, 1, 1]} : vector<2x16x32xf32> to vector<2x16x8xf32>
    %69 = vector.extract_strided_slice %39 {offsets = [0, 0, 8], sizes = [2, 16, 8], strides = [1, 1, 1]} : vector<2x16x32xf32> to vector<2x16x8xf32>
    "tpu.trace_start"() <{level = 10 : i32, message = "bqd,bkd->bqk"}> : () -> ()
    %cst_41 = arith.constant dense<0.000000e+00> : vector<2x8x16xf32>
    %70 = tpu.matmul %67, %68, %cst_41 {dimension_numbers = #tpu.dot_dimension_numbers<[2], [2], [1], [1], [0, 0, 0, 1, 1, 1], [0], [0]>} : vector<2x8x8xf32>, vector<2x16x8xf32>, vector<2x8x16xf32> -> vector<2x8x16xf32>
    "tpu.trace_stop"() : () -> ()
    %cst_42 = arith.constant 0.353553385 : f32
    %71 = vector.broadcast %cst_42 : f32 to vector<2x8x16xf32>
    %72 = arith.mulf %70, %71 : vector<2x8x16xf32>
    %73 = arith.addf %72, %6 : vector<2x8x16xf32>
    %cst_43 = arith.constant dense<0xFF800000> : vector<2x8xf32>
    %74 = vector.multi_reduction <maximumf>, %73, %cst_43 [2] : vector<2x8x16xf32> to vector<2x8xf32>
    %75 = vector.shape_cast %74 : vector<2x8xf32> to vector<2x8x1xf32>
    %76 = vector.broadcast %75 : vector<2x8x1xf32> to vector<2x8x16xf32>
    %77 = arith.subf %73, %76 : vector<2x8x16xf32>
    %78 = math.exp %77 : vector<2x8x16xf32>
    %cst_44 = arith.constant dense<0.000000e+00> : vector<2x8xf32>
    %79 = vector.multi_reduction <add>, %78, %cst_44 [2] : vector<2x8x16xf32> to vector<2x8xf32>
    %80 = vector.shape_cast %79 : vector<2x8xf32> to vector<2x8x1xf32>
    %81 = tpu.reciprocal %80 : vector<2x8x1xf32> -> vector<2x8x1xf32>
    %82 = vector.broadcast %81 : vector<2x8x1xf32> to vector<2x8x16xf32>
    %83 = arith.mulf %78, %82 : vector<2x8x16xf32>
    %c0_45 = arith.constant 0 : index
    %c1 = arith.constant 1 : index
    %c0_46 = arith.constant 0 : index
    %c0_47 = arith.constant 0 : index
    %84 = vector.load %arg19[%c0_45, %c1, %c0_46, %c0_47] : memref<2x4x8x16xf32, #tpu.memory_space<vmem>>, vector<2x1x8x16xf32>
    %85 = vector.shape_cast %84 : vector<2x1x8x16xf32> to vector<2x8x16xf32>
    %86 = vector.shape_cast %83 : vector<2x8x16xf32> to vector<2x1x8x16xf32>
    tpu.vector_store %arg19[%c0_45, %c1, %c0_46, %c0_47], %86 {strides = array<i32>} : memref<2x4x8x16xf32, #tpu.memory_space<vmem>>, vector<2x1x8x16xf32>,
    "tpu.trace_start"() <{level = 10 : i32, message = "bqk,bkd->bqd"}> : () -> ()
    %cst_48 = arith.constant dense<0.000000e+00> : vector<2x8x8xf32>
    %87 = tpu.matmul %83, %69, %cst_48 {dimension_numbers = #tpu.dot_dimension_numbers<[2], [1], [1], [2], [0, 0, 0, 1, 1, 2], [0], [0]>} : vector<2x8x16xf32>, vector<2x16x8xf32>, vector<2x8x8xf32> -> vector<2x8x8xf32>
    "tpu.trace_stop"() : () -> ()
    %88 = vector.shape_cast %87 : vector<2x8x8xf32> to vector<16x8xf32>
    %89 = vector.extract_strided_slice %40 {offsets = [8, 0], sizes = [8, 32], strides = [1, 1]} : vector<32x32xf32> to vector<8x32xf32>
    %cst_49 = arith.constant dense<0.000000e+00> : vector<16x32xf32>
    %90 = tpu.matmul %88, %89, %cst_49 {dimension_numbers = #tpu.dot_dimension_numbers<[1], [0], [0], [1], [0, 0, 1, 1], [], []>} : vector<16x8xf32>, vector<8x32xf32>, vector<16x32xf32> -> vector<16x32xf32>
    %91 = arith.addf %66, %90 : vector<16x32xf32>
    %92 = vector.extract_strided_slice %37 {offsets = [0, 0, 16], sizes = [2, 8, 8], strides = [1, 1, 1]} : vector<2x8x32xf32> to vector<2x8x8xf32>
    %93 = vector.extract_strided_slice %38 {offsets = [0, 0, 16], sizes = [2, 16, 8], strides = [1, 1, 1]} : vector<2x16x32xf32> to vector<2x16x8xf32>
    %94 = vector.extract_strided_slice %39 {offsets = [0, 0, 16], sizes = [2, 16, 8], strides = [1, 1, 1]} : vector<2x16x32xf32> to vector<2x16x8xf32>
    "tpu.trace_start"() <{level = 10 : i32, message = "bqd,bkd->bqk"}> : () -> ()
    %cst_50 = arith.constant dense<0.000000e+00> : vector<2x8x16xf32>
    %95 = tpu.matmul %92, %93, %cst_50 {dimension_numbers = #tpu.dot_dimension_numbers<[2], [2], [1], [1], [0, 0, 0, 1, 1, 1], [0], [0]>} : vector<2x8x8xf32>, vector<2x16x8xf32>, vector<2x8x16xf32> -> vector<2x8x16xf32>
    "tpu.trace_stop"() : () -> ()
    %cst_51 = arith.constant 0.353553385 : f32
    %96 = vector.broadcast %cst_51 : f32 to vector<2x8x16xf32>
    %97 = arith.mulf %95, %96 : vector<2x8x16xf32>
    %98 = arith.addf %97, %6 : vector<2x8x16xf32>
    %cst_52 = arith.constant dense<0xFF800000> : vector<2x8xf32>
    %99 = vector.multi_reduction <maximumf>, %98, %cst_52 [2] : vector<2x8x16xf32> to vector<2x8xf32>
    %100 = vector.shape_cast %99 : vector<2x8xf32> to vector<2x8x1xf32>
    %101 = vector.broadcast %100 : vector<2x8x1xf32> to vector<2x8x16xf32>
    %102 = arith.subf %98, %101 : vector<2x8x16xf32>
    %103 = math.exp %102 : vector<2x8x16xf32>
    %cst_53 = arith.constant dense<0.000000e+00> : vector<2x8xf32>
    %104 = vector.multi_reduction <add>, %103, %cst_53 [2] : vector<2x8x16xf32> to vector<2x8xf32>
    %105 = vector.shape_cast %104 : vector<2x8xf32> to vector<2x8x1xf32>
    %106 = tpu.reciprocal %105 : vector<2x8x1xf32> -> vector<2x8x1xf32>
    %107 = vector.broadcast %106 : vector<2x8x1xf32> to vector<2x8x16xf32>
    %108 = arith.mulf %103, %107 : vector<2x8x16xf32>
    %c0_54 = arith.constant 0 : index
    %c2 = arith.constant 2 : index
    %c0_55 = arith.constant 0 : index
    %c0_56 = arith.constant 0 : index
    %109 = vector.load %arg19[%c0_54, %c2, %c0_55, %c0_56] : memref<2x4x8x16xf32, #tpu.memory_space<vmem>>, vector<2x1x8x16xf32>
    %110 = vector.shape_cast %109 : vector<2x1x8x16xf32> to vector<2x8x16xf32>
    %111 = vector.shape_cast %108 : vector<2x8x16xf32> to vector<2x1x8x16xf32>
    tpu.vector_store %arg19[%c0_54, %c2, %c0_55, %c0_56], %111 {strides = array<i32>} : memref<2x4x8x16xf32, #tpu.memory_space<vmem>>, vector<2x1x8x16xf32>,
    "tpu.trace_start"() <{level = 10 : i32, message = "bqk,bkd->bqd"}> : () -> ()
    %cst_57 = arith.constant dense<0.000000e+00> : vector<2x8x8xf32>
    %112 = tpu.matmul %108, %94, %cst_57 {dimension_numbers = #tpu.dot_dimension_numbers<[2], [1], [1], [2], [0, 0, 0, 1, 1, 2], [0], [0]>} : vector<2x8x16xf32>, vector<2x16x8xf32>, vector<2x8x8xf32> -> vector<2x8x8xf32>
    "tpu.trace_stop"() : () -> ()
    %113 = vector.shape_cast %112 : vector<2x8x8xf32> to vector<16x8xf32>
    %114 = vector.extract_strided_slice %40 {offsets = [16, 0], sizes = [8, 32], strides = [1, 1]} : vector<32x32xf32> to vector<8x32xf32>
    %cst_58 = arith.constant dense<0.000000e+00> : vector<16x32xf32>
    %115 = tpu.matmul %113, %114, %cst_58 {dimension_numbers = #tpu.dot_dimension_numbers<[1], [0], [0], [1], [0, 0, 1, 1], [], []>} : vector<16x8xf32>, vector<8x32xf32>, vector<16x32xf32> -> vector<16x32xf32>
    %116 = arith.addf %91, %115 : vector<16x32xf32>
    %117 = vector.extract_strided_slice %37 {offsets = [0, 0, 24], sizes = [2, 8, 8], strides = [1, 1, 1]} : vector<2x8x32xf32> to vector<2x8x8xf32>
    %118 = vector.extract_strided_slice %38 {offsets = [0, 0, 24], sizes = [2, 16, 8], strides = [1, 1, 1]} : vector<2x16x32xf32> to vector<2x16x8xf32>
    %119 = vector.extract_strided_slice %39 {offsets = [0, 0, 24], sizes = [2, 16, 8], strides = [1, 1, 1]} : vector<2x16x32xf32> to vector<2x16x8xf32>
    "tpu.trace_start"() <{level = 10 : i32, message = "bqd,bkd->bqk"}> : () -> ()
    %cst_59 = arith.constant dense<0.000000e+00> : vector<2x8x16xf32>
    %120 = tpu.matmul %117, %118, %cst_59 {dimension_numbers = #tpu.dot_dimension_numbers<[2], [2], [1], [1], [0, 0, 0, 1, 1, 1], [0], [0]>} : vector<2x8x8xf32>, vector<2x16x8xf32>, vector<2x8x16xf32> -> vector<2x8x16xf32>
    "tpu.trace_stop"() : () -> ()
    %cst_60 = arith.constant 0.353553385 : f32
    %121 = vector.broadcast %cst_60 : f32 to vector<2x8x16xf32>
    %122 = arith.mulf %120, %121 : vector<2x8x16xf32>
    %123 = arith.addf %122, %6 : vector<2x8x16xf32>
    %cst_61 = arith.constant dense<0xFF800000> : vector<2x8xf32>
    %124 = vector.multi_reduction <maximumf>, %123, %cst_61 [2] : vector<2x8x16xf32> to vector<2x8xf32>
    %125 = vector.shape_cast %124 : vector<2x8xf32> to vector<2x8x1xf32>
    %126 = vector.broadcast %125 : vector<2x8x1xf32> to vector<2x8x16xf32>
    %127 = arith.subf %123, %126 : vector<2x8x16xf32>
    %128 = math.exp %127 : vector<2x8x16xf32>
    %cst_62 = arith.constant dense<0.000000e+00> : vector<2x8xf32>
    %129 = vector.multi_reduction <add>, %128, %cst_62 [2] : vector<2x8x16xf32> to vector<2x8xf32>
    %130 = vector.shape_cast %129 : vector<2x8xf32> to vector<2x8x1xf32>
    %131 = tpu.reciprocal %130 : vector<2x8x1xf32> -> vector<2x8x1xf32>
    %132 = vector.broadcast %131 : vector<2x8x1xf32> to vector<2x8x16xf32>
    %133 = arith.mulf %128, %132 : vector<2x8x16xf32>
    %c0_63 = arith.constant 0 : index
    %c3 = arith.constant 3 : index
    %c0_64 = arith.constant 0 : index
    %c0_65 = arith.constant 0 : index
    %134 = vector.load %arg19[%c0_63, %c3, %c0_64, %c0_65] : memref<2x4x8x16xf32, #tpu.memory_space<vmem>>, vector<2x1x8x16xf32>
    %135 = vector.shape_cast %134 : vector<2x1x8x16xf32> to vector<2x8x16xf32>
    %136 = vector.shape_cast %133 : vector<2x8x16xf32> to vector<2x1x8x16xf32>
    tpu.vector_store %arg19[%c0_63, %c3, %c0_64, %c0_65], %136 {strides = array<i32>} : memref<2x4x8x16xf32, #tpu.memory_space<vmem>>, vector<2x1x8x16xf32>,
    "tpu.trace_start"() <{level = 10 : i32, message = "bqk,bkd->bqd"}> : () -> ()
    %cst_66 = arith.constant dense<0.000000e+00> : vector<2x8x8xf32>
    %137 = tpu.matmul %133, %119, %cst_66 {dimension_numbers = #tpu.dot_dimension_numbers<[2], [1], [1], [2], [0, 0, 0, 1, 1, 2], [0], [0]>} : vector<2x8x16xf32>, vector<2x16x8xf32>, vector<2x8x8xf32> -> vector<2x8x8xf32>
    "tpu.trace_stop"() : () -> ()
    %138 = vector.shape_cast %137 : vector<2x8x8xf32> to vector<16x8xf32>
    %139 = vector.extract_strided_slice %40 {offsets = [24, 0], sizes = [8, 32], strides = [1, 1]} : vector<32x32xf32> to vector<8x32xf32>
    %cst_67 = arith.constant dense<0.000000e+00> : vector<16x32xf32>
    %140 = tpu.matmul %138, %139, %cst_67 {dimension_numbers = #tpu.dot_dimension_numbers<[1], [0], [0], [1], [0, 0, 1, 1], [], []>} : vector<16x8xf32>, vector<8x32xf32>, vector<16x32xf32> -> vector<16x32xf32>
    %141 = arith.addf %116, %140 : vector<16x32xf32>
    %c0_68 = arith.constant 0 : index
    %c0_69 = arith.constant 0 : index
    %142 = vector.load %arg9[%c0_68, %c0_69] : memref<1x32xf32, #tpu.memory_space<vmem>>, vector<1x32xf32>
    %143 = vector.broadcast %142 : vector<1x32xf32> to vector<16x32xf32>
    %144 = arith.addf %141, %143 : vector<16x32xf32>
    %145 = arith.addf %144, %1 : vector<16x32xf32>
    %c0_70 = arith.constant 0 : index
    %c0_71 = arith.constant 0 : index
    %146 = vector.load %arg16[%c0_70, %c0_71] : memref<1x32xf32, #tpu.memory_space<vmem>>, vector<1x32xf32>
    %c0_72 = arith.constant 0 : index
    %c0_73 = arith.constant 0 : index
    %147 = vector.load %arg17[%c0_72, %c0_73] : memref<1x32xf32, #tpu.memory_space<vmem>>, vector<1x32xf32>
    %cst_74 = arith.constant dense<0.000000e+00> : vector<16xf32>
    %148 = vector.multi_reduction <add>, %145, %cst_74 [1] : vector<16x32xf32> to vector<16xf32>
    %149 = vector.shape_cast %148 : vector<16xf32> to vector<16x1xf32>
    %cst_75 = arith.constant 3.200000e+01 : f32
    %150 = vector.broadcast %cst_75 : f32 to vector<16x1xf32>
    %151 = arith.divf %149, %150 : vector<16x1xf32>
    %152 = vector.broadcast %151 : vector<16x1xf32> to vector<16x32xf32>
    %153 = arith.subf %145, %152 : vector<16x32xf32>
    %154 = arith.mulf %153, %153 : vector<16x32xf32>
    %cst_76 = arith.constant dense<0.000000e+00> : vector<16xf32>
    %155 = vector.multi_reduction <add>, %154, %cst_76 [1] : vector<16x32xf32> to vector<16xf32>
    %156 = vector.shape_cast %155 : vector<16xf32> to vector<16x1xf32>
    %cst_77 = arith.constant 3.200000e+01 : f32
    %157 = vector.broadcast %cst_77 : f32 to vector<16x1xf32>
    %158 = arith.divf %156, %157 : vector<16x1xf32>
    %159 = vector.broadcast %151 : vector<16x1xf32> to vector<16x32xf32>
    %160 = arith.subf %145, %159 : vector<16x32xf32>
    %cst_78 = arith.constant 9.99999997E-7 : f32
    %161 = vector.broadcast %cst_78 : f32 to vector<16x1xf32>
    %162 = arith.addf %158, %161 : vector<16x1xf32>
    %163 = math.rsqrt %162 : vector<16x1xf32>
    %164 = vector.broadcast %163 : vector<16x1xf32> to vector<16x32xf32>
    %165 = arith.mulf %160, %164 : vector<16x32xf32>
    %166 = vector.broadcast %146 : vector<1x32xf32> to vector<16x32xf32>
    %167 = arith.mulf %165, %166 : vector<16x32xf32>
    %168 = vector.broadcast %147 : vector<1x32xf32> to vector<16x32xf32>
    %169 = arith.addf %167, %168 : vector<16x32xf32>
    %c0_79 = arith.constant 0 : index
    %c0_80 = arith.constant 0 : index
    %170 = vector.load %arg12[%c0_79, %c0_80] : memref<32x64xf32, #tpu.memory_space<vmem>>, vector<32x64xf32>
    %cst_81 = arith.constant dense<0.000000e+00> : vector<16x64xf32>
    %171 = tpu.matmul %169, %170, %cst_81 {dimension_numbers = #tpu.dot_dimension_numbers<[1], [0], [0], [1], [0, 0, 1, 1], [], []>} : vector<16x32xf32>, vector<32x64xf32>, vector<16x64xf32> -> vector<16x64xf32>
    %c0_82 = arith.constant 0 : index
    %c0_83 = arith.constant 0 : index
    %172 = vector.load %arg13[%c0_82, %c0_83] : memref<1x64xf32, #tpu.memory_space<vmem>>, vector<1x64xf32>
    %173 = vector.broadcast %172 : vector<1x64xf32> to vector<16x64xf32>
    %174 = arith.addf %171, %173 : vector<16x64xf32>
    %cst_84 = arith.constant 5.000000e-01 : f32
    %175 = vector.broadcast %cst_84 : f32 to vector<16x64xf32>
    %176 = arith.mulf %175, %174 : vector<16x64xf32>
    %cst_85 = arith.constant 0.707106769 : f32
    %177 = vector.broadcast %cst_85 : f32 to vector<16x64xf32>
    %178 = arith.mulf %174, %177 : vector<16x64xf32>
    %cst_86 = arith.constant 0.000000e+00 : f32
    %179 = vector.broadcast %cst_86 : f32 to vector<16x64xf32>
    %180 = arith.cmpf oge, %178, %179 : vector<16x64xf32>
    %cst_87 = arith.constant 1.000000e+00 : f32
    %cst_88 = arith.constant -1.000000e+00 : f32
    %181 = vector.broadcast %cst_87 : f32 to vector<16x64xf32>
    %182 = vector.broadcast %cst_88 : f32 to vector<16x64xf32>
    %183 = arith.select %180, %181, %182 : vector<16x64xi1>, vector<16x64xf32>
    %184 = math.absf %178 : vector<16x64xf32>
    %cst_89 = arith.constant 0.327591091 : f32
    %185 = vector.broadcast %cst_89 : f32 to vector<16x64xf32>
    %186 = arith.mulf %185, %184 : vector<16x64xf32>
    %cst_90 = arith.constant 1.000000e+00 : f32
    %187 = vector.broadcast %cst_90 : f32 to vector<16x64xf32>
    %188 = arith.addf %187, %186 : vector<16x64xf32>
    %189 = tpu.reciprocal %188 : vector<16x64xf32> -> vector<16x64xf32>
    %cst_91 = arith.constant 1.06140542 : f32
    %190 = vector.broadcast %cst_91 : f32 to vector<16x64xf32>
    %191 = arith.mulf %189, %190 : vector<16x64xf32>
    %cst_92 = arith.constant -1.45315206 : f32
    %192 = vector.broadcast %cst_92 : f32 to vector<16x64xf32>
    %193 = arith.addf %192, %191 : vector<16x64xf32>
    %194 = arith.mulf %189, %193 : vector<16x64xf32>
    %cst_93 = arith.constant 1.42141378 : f32
    %195 = vector.broadcast %cst_93 : f32 to vector<16x64xf32>
    %196 = arith.addf %195, %194 : vector<16x64xf32>
    %197 = arith.mulf %189, %196 : vector<16x64xf32>
    %cst_94 = arith.constant -0.284496725 : f32
    %198 = vector.broadcast %cst_94 : f32 to vector<16x64xf32>
    %199 = arith.addf %198, %197 : vector<16x64xf32>
    %200 = arith.mulf %189, %199 : vector<16x64xf32>
    %cst_95 = arith.constant 0.254829586 : f32
    %201 = vector.broadcast %cst_95 : f32 to vector<16x64xf32>
    %202 = arith.addf %201, %200 : vector<16x64xf32>
    %203 = arith.mulf %189, %202 : vector<16x64xf32>
    %cst_96 = arith.constant 0.000000e+00 : f32
    %204 = vector.broadcast %cst_96 : f32 to vector<16x64xf32>
    %205 = arith.subf %204, %184 : vector<16x64xf32>
    %206 = arith.mulf %205, %184 : vector<16x64xf32>
    %207 = math.exp %206 : vector<16x64xf32>
    %208 = arith.mulf %203, %207 : vector<16x64xf32>
    %cst_97 = arith.constant 1.000000e+00 : f32
    %209 = vector.broadcast %cst_97 : f32 to vector<16x64xf32>
    %210 = arith.subf %209, %208 : vector<16x64xf32>
    %211 = arith.mulf %183, %210 : vector<16x64xf32>
    %cst_98 = arith.constant 1.000000e+00 : f32
    %212 = vector.broadcast %cst_98 : f32 to vector<16x64xf32>
    %213 = arith.addf %212, %211 : vector<16x64xf32>
    %214 = arith.mulf %176, %213 : vector<16x64xf32>
    %c0_99 = arith.constant 0 : index
    %c0_100 = arith.constant 0 : index
    %215 = vector.load %arg14[%c0_99, %c0_100] : memref<64x32xf32, #tpu.memory_space<vmem>>, vector<64x32xf32>
    %cst_101 = arith.constant dense<0.000000e+00> : vector<16x32xf32>
    %216 = tpu.matmul %214, %215, %cst_101 {dimension_numbers = #tpu.dot_dimension_numbers<[1], [0], [0], [1], [0, 0, 1, 1], [], []>} : vector<16x64xf32>, vector<64x32xf32>, vector<16x32xf32> -> vector<16x32xf32>
    %c0_102 = arith.constant 0 : index
    %c0_103 = arith.constant 0 : index
    %217 = vector.load %arg15[%c0_102, %c0_103] : memref<1x32xf32, #tpu.memory_space<vmem>>, vector<1x32xf32>
    %218 = vector.broadcast %217 : vector<1x32xf32> to vector<16x32xf32>
    %219 = arith.addf %216, %218 : vector<16x32xf32>
    %cst_104 = arith.constant 5.000000e-01 : f32
    %220 = vector.broadcast %cst_104 : f32 to vector<16x32xf32>
    %221 = arith.mulf %220, %219 : vector<16x32xf32>
    %cst_105 = arith.constant 0.707106769 : f32
    %222 = vector.broadcast %cst_105 : f32 to vector<16x32xf32>
    %223 = arith.mulf %219, %222 : vector<16x32xf32>
    %cst_106 = arith.constant 0.000000e+00 : f32
    %224 = vector.broadcast %cst_106 : f32 to vector<16x32xf32>
    %225 = arith.cmpf oge, %223, %224 : vector<16x32xf32>
    %cst_107 = arith.constant 1.000000e+00 : f32
    %cst_108 = arith.constant -1.000000e+00 : f32
    %226 = vector.broadcast %cst_107 : f32 to vector<16x32xf32>
    %227 = vector.broadcast %cst_108 : f32 to vector<16x32xf32>
    %228 = arith.select %225, %226, %227 : vector<16x32xi1>, vector<16x32xf32>
    %229 = math.absf %223 : vector<16x32xf32>
    %cst_109 = arith.constant 0.327591091 : f32
    %230 = vector.broadcast %cst_109 : f32 to vector<16x32xf32>
    %231 = arith.mulf %230, %229 : vector<16x32xf32>
    %cst_110 = arith.constant 1.000000e+00 : f32
    %232 = vector.broadcast %cst_110 : f32 to vector<16x32xf32>
    %233 = arith.addf %232, %231 : vector<16x32xf32>
    %234 = tpu.reciprocal %233 : vector<16x32xf32> -> vector<16x32xf32>
    %cst_111 = arith.constant 1.06140542 : f32
    %235 = vector.broadcast %cst_111 : f32 to vector<16x32xf32>
    %236 = arith.mulf %234, %235 : vector<16x32xf32>
    %cst_112 = arith.constant -1.45315206 : f32
    %237 = vector.broadcast %cst_112 : f32 to vector<16x32xf32>
    %238 = arith.addf %237, %236 : vector<16x32xf32>
    %239 = arith.mulf %234, %238 : vector<16x32xf32>
    %cst_113 = arith.constant 1.42141378 : f32
    %240 = vector.broadcast %cst_113 : f32 to vector<16x32xf32>
    %241 = arith.addf %240, %239 : vector<16x32xf32>
    %242 = arith.mulf %234, %241 : vector<16x32xf32>
    %cst_114 = arith.constant -0.284496725 : f32
    %243 = vector.broadcast %cst_114 : f32 to vector<16x32xf32>
    %244 = arith.addf %243, %242 : vector<16x32xf32>
    %245 = arith.mulf %234, %244 : vector<16x32xf32>
    %cst_115 = arith.constant 0.254829586 : f32
    %246 = vector.broadcast %cst_115 : f32 to vector<16x32xf32>
    %247 = arith.addf %246, %245 : vector<16x32xf32>
    %248 = arith.mulf %234, %247 : vector<16x32xf32>
    %cst_116 = arith.constant 0.000000e+00 : f32
    %249 = vector.broadcast %cst_116 : f32 to vector<16x32xf32>
    %250 = arith.subf %249, %229 : vector<16x32xf32>
    %251 = arith.mulf %250, %229 : vector<16x32xf32>
    %252 = math.exp %251 : vector<16x32xf32>
    %253 = arith.mulf %248, %252 : vector<16x32xf32>
    %cst_117 = arith.constant 1.000000e+00 : f32
    %254 = vector.broadcast %cst_117 : f32 to vector<16x32xf32>
    %255 = arith.subf %254, %253 : vector<16x32xf32>
    %256 = arith.mulf %228, %255 : vector<16x32xf32>
    %cst_118 = arith.constant 1.000000e+00 : f32
    %257 = vector.broadcast %cst_118 : f32 to vector<16x32xf32>
    %258 = arith.addf %257, %256 : vector<16x32xf32>
    %259 = arith.mulf %221, %258 : vector<16x32xf32>
    %260 = arith.addf %259, %145 : vector<16x32xf32>
    %261 = vector.shape_cast %260 : vector<16x32xf32> to vector<2x8x32xf32>
    %c0_119 = arith.constant 0 : index
    %c0_120 = arith.constant 0 : index
    %c0_121 = arith.constant 0 : index
    %262 = vector.load %arg18[%c0_119, %c0_120, %c0_121] : memref<2x8x32xf32, #tpu.memory_space<vmem>>, vector<2x8x32xf32>
    tpu.vector_store %arg18[%c0_119, %c0_120, %c0_121], %261 {strides = array<i32>} : memref<2x8x32xf32, #tpu.memory_space<vmem>>, vector<2x8x32xf32>,
    return
  }
  func.func @transform_0(%arg0: i32) -> (i32, i32, i32) {
    %c0_i32 = arith.constant 0 : i32
    %c0_i32_0 = arith.constant 0 : i32
    %c0_i32_1 = arith.constant 0 : i32
    return %arg0, %c0_i32, %c0_i32_0 : i32, i32, i32
  }
  func.func @transform_1(%arg0: i32) -> (i32, i32, i32) {
    %c0_i32 = arith.constant 0 : i32
    %c0_i32_0 = arith.constant 0 : i32
    %c0_i32_1 = arith.constant 0 : i32
    return %arg0, %c0_i32, %c0_i32_0 : i32, i32, i32
  }
  func.func @transform_2(%arg0: i32) -> (i32, i32, i32) {
    %c0_i32 = arith.constant 0 : i32
    %c0_i32_0 = arith.constant 0 : i32
    %c0_i32_1 = arith.constant 0 : i32
    return %arg0, %c0_i32, %c0_i32_0 : i32, i32, i32
  }
  func.func @transform_3(%arg0: i32) -> (i32, i32, i32) {
    %c0_i32 = arith.constant 0 : i32
    %c0_i32_0 = arith.constant 0 : i32
    %c0_i32_1 = arith.constant 0 : i32
    return %arg0, %c0_i32, %c0_i32_0 : i32, i32, i32
  }
  func.func @transform_4(%arg0: i32) -> (i32, i32) {
    %c0_i32 = arith.constant 0 : i32
    %c0_i32_0 = arith.constant 0 : i32
    %c0_i32_1 = arith.constant 0 : i32
    return %c0_i32, %c0_i32_0 : i32, i32
  }
  func.func @transform_5(%arg0: i32) -> (i32, i32) {
    %c0_i32 = arith.constant 0 : i32
    %c0_i32_0 = arith.constant 0 : i32
    %c0_i32_1 = arith.constant 0 : i32
    return %c0_i32, %c0_i32_0 : i32, i32
  }
  func.func @transform_6(%arg0: i32) -> (i32, i32) {
    %c0_i32 = arith.constant 0 : i32
    %c0_i32_0 = arith.constant 0 : i32
    %c0_i32_1 = arith.constant 0 : i32
    return %c0_i32, %c0_i32_0 : i32, i32
  }
  func.func @transform_7(%arg0: i32) -> (i32, i32) {
    %c0_i32 = arith.constant 0 : i32
    %c0_i32_0 = arith.constant 0 : i32
    %c0_i32_1 = arith.constant 0 : i32
    return %c0_i32, %c0_i32_0 : i32, i32
  }
  func.func @transform_8(%arg0: i32) -> (i32, i32) {
    %c0_i32 = arith.constant 0 : i32
    %c0_i32_0 = arith.constant 0 : i32
    %c0_i32_1 = arith.constant 0 : i32
    return %c0_i32, %c0_i32_0 : i32, i32
  }
  func.func @transform_9(%arg0: i32) -> (i32, i32) {
    %c0_i32 = arith.constant 0 : i32
    %c0_i32_0 = arith.constant 0 : i32
    %c0_i32_1 = arith.constant 0 : i32
    return %c0_i32, %c0_i32_0 : i32, i32
  }
  func.func @transform_10(%arg0: i32) -> (i32, i32) {
    %c0_i32 = arith.constant 0 : i32
    %c0_i32_0 = arith.constant 0 : i32
    %c0_i32_1 = arith.constant 0 : i32
    return %c0_i32, %c0_i32_0 : i32, i32
  }
  func.func @transform_11(%arg0: i32) -> (i32, i32) {
    %c0_i32 = arith.constant 0 : i32
    %c0_i32_0 = arith.constant 0 : i32
    %c0_i32_1 = arith.constant 0 : i32
    return %c0_i32, %c0_i32_0 : i32, i32
  }
  func.func @transform_12(%arg0: i32) -> (i32, i32) {
    %c0_i32 = arith.constant 0 : i32
    %c0_i32_0 = arith.constant 0 : i32
    %c0_i32_1 = arith.constant 0 : i32
    return %c0_i32, %c0_i32_0 : i32, i32
  }
  func.func @transform_13(%arg0: i32) -> (i32, i32) {
    %c0_i32 = arith.constant 0 : i32
    %c0_i32_0 = arith.constant 0 : i32
    %c0_i32_1 = arith.constant 0 : i32
    return %c0_i32, %c0_i32_0 : i32, i32
  }
  func.func @transform_14(%arg0: i32) -> (i32, i32) {
    %c0_i32 = arith.constant 0 : i32
    %c0_i32_0 = arith.constant 0 : i32
    %c0_i32_1 = arith.constant 0 : i32
    return %c0_i32, %c0_i32_0 : i32, i32
  }
  func.func @transform_15(%arg0: i32) -> (i32, i32) {
    %c0_i32 = arith.constant 0 : i32
    %c0_i32_0 = arith.constant 0 : i32
    %c0_i32_1 = arith.constant 0 : i32
    return %c0_i32, %c0_i32_0 : i32, i32
  }
  func.func @transform_16(%arg0: i32) -> (i32, i32) {
    %c0_i32 = arith.constant 0 : i32
    %c0_i32_0 = arith.constant 0 : i32
    %c0_i32_1 = arith.constant 0 : i32
    return %c0_i32, %c0_i32_0 : i32, i32
  }
  func.func @transform_17(%arg0: i32) -> (i32, i32, i32) {
    %c0_i32 = arith.constant 0 : i32
    %c0_i32_0 = arith.constant 0 : i32
    %c0_i32_1 = arith.constant 0 : i32
    return %arg0, %c0_i32, %c0_i32_0 : i32, i32, i32
  }
  func.func @transform_18(%arg0: i32) -> (i32, i32, i32, i32) {
    %c0_i32 = arith.constant 0 : i32
    %c0_i32_0 = arith.constant 0 : i32
    %c0_i32_1 = arith.constant 0 : i32
    %c0_i32_2 = arith.constant 0 : i32
    return %arg0, %c0_i32, %c0_i32_0, %c0_i32_1 : i32, i32, i32, i32
  }
}

</mosaic_0001>

<bundles_post_ra>
// kernel: tpu_custom_call.1
= control target key start
LH: loop header
LB: loop body
LE: loop exit
PB: predicated region body
PF: predicated region fallthrough
CT: control target
= control target key end

     0   :  { %s3955_s0 = inlined_call_operand.hbm [shape: f32[2,8,32], index: 0, kind: input, shape index: {}]   ;;  %s3956_s1 = inlined_call_operand.vmem [shape: f32[2,16,32], index: 1, kind: input, shape index: {}]   ;;  %s3957_s2 = inlined_call_operand.vmem [shape: f32[2,16,32], index: 2, kind: input, shape index: {}]   ;;  %s3958_s3 = inlined_call_operand.hbm [shape: f32[2,8,16], index: 3, kind: input, shape index: {}]   ;;  %s3959_s4 = inlined_call_operand.vmem [shape: f32[32,32], index: 4, kind: input, shape index: {}]   ;;  %s3960_s5 = inlined_call_operand.hbm [shape: f32[32,32], index: 5, kind: input, shape index: {}]   ;;  %s3961_s6 = inlined_call_operand.hbm [shape: f32[32,32], index: 6, kind: input, shape index: {}]   ;;  %s3962_s7 = inlined_call_operand.hbm [shape: f32[32,32], index: 7, kind: input, shape index: {}]   ;;  %s3963_s8 = inlined_call_operand.vmem [shape: f32[1,32], index: 8, kind: input, shape index: {}]   ;;  %s3964_s9 = inlined_call_operand.vmem [shape: f32[1,32], index: 9, kind: input, shape index: {}]   ;;  %s3965_s10 = inlined_call_operand.vmem [shape: f32[1,32], index: 10, kind: input, shape index: {}]   ;;  %s3966_s11 = inlined_call_operand.hbm [shape: f32[32,64], index: 11, kind: input, shape index: {}]   ;;  %s3967_s12 = inlined_call_operand.vmem [shape: f32[1,64], index: 12, kind: input, shape index: {}]   ;;  %s3968_s13 = inlined_call_operand.vmem [shape: f32[64,32], index: 13, kind: input, shape index: {}]   ;;  %s3969_s14 = inlined_call_operand.vmem [shape: f32[1,32], index: 14, kind: input, shape index: {}]   ;;  %s3970_s15 = inlined_call_operand.vmem [shape: f32[1,32], index: 15, kind: input, shape index: {}]   ;;  %s3971_s16 = inlined_call_operand.vmem [shape: f32[1,32], index: 16, kind: input, shape index: {}]   ;;  %s3972_s17 = inlined_call_operand.hbm [shape: f32[2,8,32], index: 17, kind: output, shape index: {0}]   ;;  %s3973_s18 = inlined_call_operand.hbm [shape: f32[2,4,8,16], index: 18, kind: output, shape index: {1}]  }
   0x1   :  { %3978 = sst [smem:[#allocation22_spill]] %s3955_s0 }
   0x2   :  { %3979 = sst [smem:[#allocation23_spill]] %s3956_s1 }
   0x3   :  { %3980 = sst [smem:[#allocation24_spill]] %s3957_s2 }
   0x4   :  { %3981 = sst [smem:[#allocation25_spill]] %s3972_s17 }
   0x5   :  { %24 = vsyncpa [#allocation3], 0 }
   0x6   :  { %25 = vsyncpa [#allocation6], 0 }
   0x7   :  { %26 = vsyncpa [#allocation9], 0 }
   0x8   :  { %27 = vsyncpa [#allocation12], 0 }
   0x9   :  { %28 = vsyncpa [#allocation4], 0 }
   0xa   :  { %29 = vsyncpa [#allocation15], 0  ;;  %s3389_s27 = smov [#allocation5]   ;;  %s3390_s29 = smov [#allocation8]  }
   0xb   :  { %s51_s28 = sshll.u32 %s3389_s27, 4  ;;  %s77_s30 = sshll.u32 %s3390_s29, 4  ;;  %s52_s28 = int_to_ptr.vmem [resolvable:$true] %s51_s28  ;;  %s3501_s30 = int_to_ptr.vmem [resolvable:$true] %s77_s30 }
   0xc   :  { %s3201_s1 = scalar_lea.hbm %s3958_s3, 256 }
   0xd   :  { %p3202_p0 = scmp.ne.s32.totalorder %s3958_s3, %s3201_s1  ;;  %p3205_p1 = scmp.lt.u32.totalorder %s3201_s1, %s3958_s3 }
   0xf   :  { %p3207_p2 = pnand %p3205_p1, %p3202_p0 }
  0x11   :  { %3210 = shalt.err (!%p3207_p2)
}
  0x12   :  { %s3211_s23 = scalar_lea.vmem %s52_s28, 256  ;;  %p3216_p4 = scmp.lt.s32.totalorder %s52_s28, %s52_s28 }
  0x13   :  { %p3212_p3 = scmp.ne.s32.totalorder %s52_s28, %s3211_s23  ;;  %p3217_p5 = scmp.lt.s32.totalorder %s3211_s23, %s3211_s23 }
  0x15   :  { %p3218_p6 = por %p3217_p5, %p3216_p4 }
  0x17   :  { %p3219_p7 = pnand %p3218_p6, %p3212_p3 }
  0x19   :  { %3222 = shalt.err (!%p3219_p7)
}
  0x1a   :  { %s3391_s24 = smov 128   ;;  %s3392_s25 = smov 8  }
  0x1b   :  { %57 = dma.hbm_to_vmem [thread:$0]  %s3958_s3, 256, %s52_s28, [#allocation6], %s3391_s24, %s3391_s24, %s3392_s25  }
  0x1c   :  { %s3223_s19 = scalar_lea.hbm %s3961_s6, 512 }
  0x1d   :  { %p3224_p8 = scmp.ne.s32.totalorder %s3961_s6, %s3223_s19  ;;  %p3227_p9 = scmp.lt.u32.totalorder %s3223_s19, %s3961_s6 }
  0x1f   :  { %p3229_p10 = pnand %p3227_p9, %p3224_p8 }
  0x21   :  { %3232 = shalt.err (!%p3229_p10)
}
  0x22   :  { %s3233_s2 = scalar_lea.vmem %s3501_s30, 512  ;;  %p3238_p12 = scmp.lt.s32.totalorder %s3501_s30, %s3501_s30 }
  0x23   :  { %p3234_p11 = scmp.ne.s32.totalorder %s3501_s30, %s3233_s2  ;;  %p3239_p13 = scmp.lt.s32.totalorder %s3233_s2, %s3233_s2 }
  0x25   :  { %p3240_p0 = por %p3239_p13, %p3238_p12 }
  0x27   :  { %p3241_p1 = pnand %p3240_p0, %p3234_p11 }
  0x29   :  { %3244 = shalt.err (!%p3241_p1)
}
  0x2a   :  { %83 = dma.hbm_to_vmem [thread:$0]  %s3961_s6, 512, %s3501_s30, [#allocation9], %s3391_s24, %s3391_s24, %s3392_s25  }
  0x2b   :  { %s3393_s23 = smov [#allocation2]   ;;  %s3394_s27 = smov [#allocation7]  }
  0x2c   :  { %s35_s26 = sshll.u32 %s3393_s23, 4  ;;  %s65_s29 = sshll.u32 %s3394_s27, 4  ;;  %s36_s26 = int_to_ptr.vmem [resolvable:$true] %s35_s26  ;;  %s3538_s29 = int_to_ptr.vmem [resolvable:$true] %s65_s29 }
  0x2d   :  { %s3982_s1 = sld [smem:[#allocation22_spill]] }
  0x33   :  { %s3245_s20 = scalar_lea.hbm %s3982_s1, 256 }
  0x34   :  { %p3246_p2 = scmp.ne.s32.totalorder %s3982_s1, %s3245_s20  ;;  %p3249_p3 = scmp.lt.u32.totalorder %s3245_s20, %s3982_s1 }
  0x36   :  { %p3251_p4 = pnand %p3249_p3, %p3246_p2 }
  0x38   :  { %3254 = shalt.err (!%p3251_p4)
}
  0x39   :  { %s3255_s6 = scalar_lea.vmem %s36_s26, 256  ;;  %p3260_p6 = scmp.lt.s32.totalorder %s36_s26, %s36_s26 }
  0x3a   :  { %p3256_p5 = scmp.ne.s32.totalorder %s36_s26, %s3255_s6  ;;  %p3261_p7 = scmp.lt.s32.totalorder %s3255_s6, %s3255_s6 }
  0x3c   :  { %p3262_p8 = por %p3261_p7, %p3260_p6 }
  0x3e   :  { %p3263_p9 = pnand %p3262_p8, %p3256_p5 }
  0x40   :  { %3266 = shalt.err (!%p3263_p9)
}
  0x41   :  { %41 = dma.hbm_to_vmem [thread:$0]  %s3982_s1, 256, %s36_s26, [#allocation3], %s3391_s24, %s3391_s24, %s3392_s25  }
  0x42   :  { %s3267_s17 = scalar_lea.hbm %s3960_s5, 512 }
  0x43   :  { %p3268_p10 = scmp.ne.s32.totalorder %s3960_s5, %s3267_s17  ;;  %p3271_p11 = scmp.lt.u32.totalorder %s3267_s17, %s3960_s5 }
  0x45   :  { %p3273_p12 = pnand %p3271_p11, %p3268_p10 }
  0x47   :  { %3276 = shalt.err (!%p3273_p12)
}
  0x48   :  { %s3277_s21 = scalar_lea.vmem %s3538_s29, 512  ;;  %p3282_p0 = scmp.lt.s32.totalorder %s3538_s29, %s3538_s29 }
  0x49   :  { %p3278_p13 = scmp.ne.s32.totalorder %s3538_s29, %s3277_s21  ;;  %p3283_p1 = scmp.lt.s32.totalorder %s3277_s21, %s3277_s21 }
  0x4b   :  { %p3284_p2 = por %p3283_p1, %p3282_p0 }
  0x4d   :  { %p3285_p3 = pnand %p3284_p2, %p3278_p13 }
  0x4f   :  { %3288 = shalt.err (!%p3285_p3)
}
  0x50   :  { %71 = dma.hbm_to_vmem [thread:$0]  %s3960_s5, 512, %s3538_s29, [#allocation6], %s3391_s24, %s3391_s24, %s3392_s25  }
  0x51   :  { %s3395_s22 = smov [#allocation10]   ;;  %s3396_s6 = smov [#allocation11]  }
  0x52   :  { %s89_s2 = sshll.u32 %s3395_s22, 4  ;;  %s107_s30 = sshll.u32 %s3396_s6, 4  ;;  %s90_s2 = int_to_ptr.vmem [resolvable:$true] %s89_s2  ;;  %s3575_s30 = int_to_ptr.vmem [resolvable:$true] %s107_s30 }
  0x53   :  { %s3289_s23 = scalar_lea.hbm %s3962_s7, 512 }
  0x54   :  { %p3290_p4 = scmp.ne.s32.totalorder %s3962_s7, %s3289_s23  ;;  %p3293_p5 = scmp.lt.u32.totalorder %s3289_s23, %s3962_s7 }
  0x56   :  { %p3295_p6 = pnand %p3293_p5, %p3290_p4 }
  0x58   :  { %3298 = shalt.err (!%p3295_p6)
}
  0x59   :  { %s3299_s5 = scalar_lea.vmem %s90_s2, 512  ;;  %p3304_p8 = scmp.lt.s32.totalorder %s90_s2, %s90_s2 }
  0x5a   :  { %p3300_p7 = scmp.ne.s32.totalorder %s90_s2, %s3299_s5  ;;  %p3305_p9 = scmp.lt.s32.totalorder %s3299_s5, %s3299_s5 }
  0x5c   :  { %p3306_p10 = por %p3305_p9, %p3304_p8 }
  0x5e   :  { %p3307_p11 = pnand %p3306_p10, %p3300_p7 }
  0x60   :  { %3310 = shalt.err (!%p3307_p11)
}
  0x61   :  { %95 = dma.hbm_to_vmem [thread:$0]  %s3962_s7, 512, %s90_s2, [#allocation9], %s3391_s24, %s3391_s24, %s3392_s25  }
  0x62   :  { %s3311_s1 = scalar_lea.hbm %s3966_s11, 512 }
  0x63   :  { %p3312_p12 = scmp.ne.s32.totalorder %s3966_s11, %s3311_s1  ;;  %p3315_p13 = scmp.lt.u32.totalorder %s3311_s1, %s3966_s11 }
  0x65   :  { %p3317_p0 = pnand %p3315_p13, %p3312_p12 }
  0x67   :  { %3320 = shalt.err (!%p3317_p0)
}
  0x68   :  { %s3321_s23 = scalar_lea.vmem %s3575_s30, 512  ;;  %p3326_p2 = scmp.lt.s32.totalorder %s3575_s30, %s3575_s30 }
  0x69   :  { %p3322_p1 = scmp.ne.s32.totalorder %s3575_s30, %s3321_s23  ;;  %p3327_p3 = scmp.lt.s32.totalorder %s3321_s23, %s3321_s23 }
  0x6b   :  { %p3328_p4 = por %p3327_p3, %p3326_p2 }
  0x6d   :  { %p3329_p5 = pnand %p3328_p4, %p3322_p1 }
  0x6f   :  { %3332 = shalt.err (!%p3329_p5)
}
  0x70   :  { %113 = dma.hbm_to_vmem [thread:$0]  %s3966_s11, 512, %s3575_s30, [#allocation12], %s3391_s24, %s3391_s24, %s3392_s25  }
  0x71   :  { %3377 = dma.done.wait [#allocation3], 256  }
  0x72   :  { %3378 = vsyncadd [#allocation3], 4294967040 }
  0x73   :  { %3379 = dma.done.wait [#allocation6], 768  }
  0x74   :  { %3380 = vsyncadd [#allocation6], 4294966528 }
  0x75   :  { %3381 = dma.done.wait [#allocation9], 1024  }
  0x76   :  { %3382 = vsyncadd [#allocation9], 4294966272 }
  0x77   :  { %3383 = dma.done.wait [#allocation12], 512  }
  0x78   :  { %3384 = vsyncadd [#allocation12], 4294966784  ;;  %vm156_vm0 = vcmask 261120   ;;  %v3612_v0 = vld [vmem:[#allocation2] sm:$0xff]  ;;  %v3614_v1 = vld [vmem:[#allocation2 + $0x8] sm:$0xff]  ;;  %s3983_s6 = sld [smem:[#allocation23_spill]] }
  0x79   :  { %v157_v2 = vsel %vm156_vm0, %v3612_v0, 0.0  ;;  %v160_v3 = vsel %vm156_vm0, %v3614_v1, 0.0  ;;  %v200_v14 = vld [vmem:[%s3959_s4] sm:$0xff]  ;;  %v201_v15 = vld [vmem:[%s3959_s4 + $0x8] sm:$0xff]  ;;  %v202_v16 = vld [vmem:[%s3959_s4 + $0x10] sm:$0xff]  ;;  %v3397_v52 = vmov 0.0|0.0  }
  0x7a   :  { %158 = vadd.xlane.f32.xlu0 %v157_v2  ;;  %v2958_v17 = vpack.c.bf16 %v201_v15, %v200_v14  ;;  %v203_v18 = vld [vmem:[%s3959_s4 + $0x18] sm:$0xff]  ;;  %v285_v20 = vld [vmem:[#allocation7] sm:$0xff]  ;;  %v286_v21 = vld [vmem:[#allocation7 + $0x8] sm:$0xff]  ;;  %s3984_s30 = sld [smem:[#allocation24_spill]]  ;;  %vm3398_vm1 = vmmov 0   ;;  %v3399_v57 = vmov 0.0  }
  0x7b   :  { %v2962_v19 = vpack.c.bf16 %v203_v18, %v202_v16  ;;  %v2966_v22 = vpack.c.bf16 %v286_v21, %v285_v20  ;;  %v2598_v30 = vld [vmem:[%s3964_s9] ss:$0 sm:$0xff]  ;;  %v287_v37 = vld [vmem:[#allocation7 + $0x10] sm:$0xff]  ;;  %v288_v38 = vld [vmem:[#allocation7 + $0x18] sm:$0xff]  ;;  %vm491_vm2 = vcmask 64512   ;;  %vm654_vm4 = vcmask 130048  }
  0x7c   :  { %2959 = vmatprep.subr.bf16.mxu1 %v2958_v17  ;;  %v2599_v32 = vld [vmem:[%s3965_s10] ss:$0 sm:$0xff]  ;;  %v2970_v41 = vpack.c.bf16 %v288_v38, %v287_v37  ;;  %v387_v47 = vld [vmem:[#allocation8 + $0x8] sm:$0xff]  ;;  %v388_v49 = vld [vmem:[#allocation8 + $0x10] sm:$0xff]  ;;  %s3400_s20 = smov 120   ;;  %s3401_s4 = smov 112  }
  0x7d   :  { %2961 = vmatpush3.bf16.msra.mxu1 %v2958_v17  ;;  %v386_v46 = vld [vmem:[#allocation8] sm:$0xff]  ;;  %v389_v50 = vld [vmem:[#allocation8 + $0x18] sm:$0xff]  ;;  %vm3688_vm3 = vmpackc.low %vm491_vm2, %vm491_vm2  ;;  %s3402_s21 = smov 104   ;;  %vm2424_vm7 = vcmask 523264  }
  0x7e   :  { %161 = vadd.xlane.f32.xlu0 %v160_v3  ;;  %2963 = vmatprep.subr.bf16.mxu1 %v2962_v19  ;;  %v144_v42 = vld [vmem:[%s3983_s6] sm:$0xff]  ;;  %v145_v43 = vld [vmem:[%s3983_s6 + $0x8] sm:$0xff]  ;;  %v146_v44 = vld [vmem:[%s3983_s6 + $0x10] sm:$0xff]  ;;  %v2974_v48 = vpack.c.bf16 %v387_v47, %v386_v46  ;;  %v2978_v51 = vpack.c.bf16 %v389_v50, %v388_v49 }
  0x7f   :  { %v147_v45 = vld [vmem:[%s3983_s6 + $0x18] sm:$0xff]  ;;  %v3715_v16 = vld [vmem:[#allocation5] sm:$0xff] }
  0x80   :  { %2975 = vmatprep.subr.bf16.mxu0 %v2974_v48  ;;  %v148_v53 = vld [vmem:[%s3984_s30] sm:$0xff]  ;;  %v149_v54 = vld [vmem:[%s3984_s30 + $0x8] sm:$0xff]  ;;  %v150_v55 = vld [vmem:[%s3984_s30 + $0x10] sm:$0xff] }
  0x81   :  { %2965 = vmatpush3.bf16.msra.mxu1 %v2962_v19  ;;  %2977 = vmatpush3.bf16.msra.mxu0 %v2974_v48  ;;  %v151_v56 = vld [vmem:[%s3984_s30 + $0x18] sm:$0xff] }
  0x82   :  { %2967 = vmatprep.subr.bf16.mxu1 %v2966_v22  ;;  %2979 = vmatprep.subr.bf16.mxu0 %v2978_v51  ;;  %v3718_v21 = vld [vmem:[#allocation5 + $0x8] sm:$0xff] }
  0x83   :  { %2790 = vmatprep.mubr.msk.f32.mxu0 %vm156_vm0, %v148_v53 }
  0x85   :  { %2981 = vmatpush3.bf16.msra.mxu0 %v2978_v51 }
  0x86   :  { %2986 = vmatprep.subr.bf16.mxu0 %v3397_v52 }
  0x88   :  { %2791 = vmatmul.mubr.msk.f32.vlgmr.msra.gmra.mrb[0].mxu0 %vm156_vm0, %v149_v54 }
  0x89   :  { %2793 = vmatprep.mubr.msk.f32.mxu0 %vm156_vm0, %v150_v55 }
  0x8c   :  { %2794 = vmatmul.mubr.msk.f32.gmra.mrb[2].mxu0 %vm156_vm0, %v151_v56 }
  0x8d   :  { %2807 = vmatprep.mubr.msk.f32.mxu0 %vm3398_vm1, %v3399_v57 }
 0x107   :  { %v159_v4 = vpop.xlane.xlu0 %158 }
 0x108   :  { %v164_v5 = vmul.f32 0.03125, %v159_v4 }
 0x10a   :  { %v166_v6 = vsub.f32 %v3612_v0, %v164_v5 }
 0x10b   :  { %v162_v7 = vpop.xlane.xlu0 %161 }
 0x10c   :  { %v165_v8 = vmul.f32 0.03125, %v162_v7  ;;  %v168_v9 = vmul.f32 %v166_v6, %v166_v6 }
 0x10e   :  { %v167_v10 = vsub.f32 %v3614_v1, %v165_v8  ;;  %v170_v11 = vsel %vm156_vm0, %v168_v9, 0.0 }
 0x10f   :  { %171 = vadd.xlane.f32.xlu1 %v170_v11 }
 0x110   :  { %v169_v12 = vmul.f32 %v167_v10, %v167_v10 }
 0x112   :  { %v173_v13 = vsel %vm156_vm0, %v169_v12, 0.0 }
 0x113   :  { %174 = vadd.xlane.f32.xlu1 %v173_v13 }
 0x15b   :  { %v2792_v7 = vpop.f32.mrb[0].mxu0 }
 0x15c   :  { %v468_v8 = vpop.f32.mrb[1].mxu0 }
 0x15d   :  { %v2991_v9 = vpack.c.bf16 %v2792_v7, %v468_v8  ;;  %v3710_v12 = vpack.i.bf16 %v2792_v7, %v468_v8 }
 0x19c   :  { %v172_v23 = vpop.xlane.xlu1 %171 }
 0x19d   :  { %v176_v24 = vmul.f32 0.03125, %v172_v23 }
 0x19f   :  { %v178_v25 = vadd.f32 1e-06, %v176_v24 }
 0x1a0   :  { %v175_v26 = vpop.xlane.xlu1 %174 }
 0x1a1   :  { %3145 = vrsqrt.f32 %v178_v25  ;;  %v177_v27 = vmul.f32 0.03125, %v175_v26 }
 0x1a3   :  { %v179_v28 = vadd.f32 1e-06, %v177_v27 }
 0x1a5   :  { %3147 = vrsqrt.f32 %v179_v28 }
 0x1ab   :  { %v3146_v29 = vpop.eup %3145 }
 0x1ac   :  { %v182_v31 = vmul.f32 %v3146_v29, %v166_v6 }
 0x1ae   :  { %v190_v33 = vmul.f32 %v2598_v30, %v182_v31 }
 0x1af   :  { %v3148_v34 = vpop.eup %3147 }
 0x1b0   :  { %v183_v35 = vmul.f32 %v3148_v34, %v167_v10  ;;  %v198_v36 = vadd.f32 %v2599_v32, %v190_v33  ;;  %v2795_v10 = vpop.f32.mrb[2].mxu0 }
 0x1b1   :  { %v478_v11 = vpop.f32.mrb[3].mxu0 }
 0x1b2   :  { %v191_v39 = vmul.f32 %v2598_v30, %v183_v35  ;;  %2765 = vmatprep.mubr.msk.f32.mxu1 %vm156_vm0, %v198_v36  ;;  %v2994_v13 = vpack.c.bf16 %v2795_v10, %v478_v11  ;;  %v3713_v14 = vpack.i.bf16 %v2795_v10, %v478_v11 }
 0x1b4   :  { %v199_v40 = vadd.f32 %v2599_v32, %v191_v39 }
 0x1b6   :  { %2766 = vmatmul.mubr.msk.f32.vlgmr.msra.gmra.mrb[0].mxu1 %vm156_vm0, %v199_v40 }
 0x1b7   :  { %2969 = vmatpush3.bf16.msra.mxu1 %v2966_v22  ;;  %2776 = vmatprep.mubr.msk.f32.mxu1 %vm156_vm0, %v144_v42 }
 0x1b8   :  { %2971 = vmatprep.subr.bf16.mxu1 %v2970_v41 }
 0x1bb   :  { %2973 = vmatpush3.bf16.msra.mxu1 %v2970_v41 }
 0x1bc   :  { %2982 = vmatprep.subr.bf16.mxu1 %v3397_v52 }
 0x1be   :  { %2777 = vmatmul.mubr.msk.f32.vlgmr.msra.gmra.mrb[2].mxu1 %vm156_vm0, %v145_v43 }
 0x1bf   :  { %2779 = vmatprep.mubr.msk.f32.mxu1 %vm156_vm0, %v146_v44 }
 0x1c2   :  { %2780 = vmatmul.mubr.msk.f32.gmra.mrb[4].mxu1 %vm156_vm0, %v147_v45 }
 0x1c3   :  { %2800 = vmatprep.mubr.msk.f32.mxu1 %vm3398_vm1, %v3399_v57 }
 0x289   :  { %v3682_v58 = vpop.f32.mrb[0].mxu1 }
 0x28a   :  { %v3684_v59 = vpop.f32.mrb[1].mxu1 }
 0x291   :  { %v2778_v60 = vpop.f32.mrb[2].mxu1 }
 0x292   :  { %v367_v61 = vpop.f32.mrb[3].mxu1 }
 0x293   :  { %v2983_v63 = vpack.c.bf16 %v2778_v60, %v367_v61  ;;  %v3692_v2 = vpack.i.bf16 %v2778_v60, %v367_v61 }
 0x295   :  { %v2781_v3 = vpop.f32.mrb[4].mxu1  ;;  %2985 = vmatpush3.bf16.xpose.msk.msra.mxu1 %vm3688_vm3, %v2983_v63 }
 0x296   :  { %v377_v4 = vpop.f32.mrb[5].mxu1  ;;  %2990 = vmatprep.subr.bf16.mxu1 %v3397_v52 }
 0x297   :  { %v2987_v5 = vpack.c.bf16 %v2781_v3, %v377_v4  ;;  %v3697_v6 = vpack.i.bf16 %v2781_v3, %v377_v4 }
 0x299   :  { %2989 = vmatpush3.bf16.xpose.msk.msra.mxu0 %vm3688_vm3, %v2987_v5 }
 0x29a   :  { %2996 = vmatprep.subr.bf16.mxu0 %v3397_v52 }
 0x29c   :  { %2801 = vmatmul.mubr.msk.f32.vlgmr.msra.gmra.mrb[6].mxu1 %vm491_vm2, %v3684_v59 }
 0x29d   :  { %2814 = vmatprep.mubr.msk.f32.mxu1 %vm3398_vm1, %v3399_v57  ;;  %2992 = vmatpush3.bf16.msra.mxu1 %v2991_v9 }
 0x29e   :  { %2993 = vmatprep.subr.bf16.mxu1 %v3397_v52 }
 0x2a0   :  { %2808 = vmatmul.mubr.msk.f32.vlgmr.msra.gmra.mrb[4].mxu0 %vm491_vm2, %v3682_v58 }
 0x2a1   :  { %2828 = vmatprep.mubr.msk.f32.mxu0 %vm3398_vm1, %v3399_v57 }
 0x36f   :  { %v567_v15 = vpop.f32.mrb[6].mxu1 }
 0x370   :  { %v650_v17 = vmul.f32 0.35355338, %v567_v15  ;;  %v2802_v18 = vpop.f32.mrb[7].mxu1 }
 0x372   :  { %v652_v19 = vadd.f32 %v650_v17, %v3715_v16 }
 0x373   :  { %v646_v20 = vpop.f32.mrb[4].mxu0 }
 0x374   :  { %v651_v22 = vmul.f32 0.35355338, %v646_v20  ;;  %v2809_v23 = vpop.f32.mrb[5].mxu0  ;;  %v655_v24 = vsel %vm654_vm4, %v652_v19, -inf }
 0x375   :  { %656 = vmax.xlane.f32.xlu0 %v655_v24 }
 0x376   :  { %v653_v25 = vadd.f32 %v651_v22, %v3718_v21 }
 0x378   :  { %v658_v26 = vsel %vm654_vm4, %v653_v25, -inf }
 0x379   :  { %659 = vmax.xlane.f32.xlu1 %v658_v26 }
 0x38a   :  { %3091 = vrot.lane.b32.xlu1 %v3697_v6, %s3400_s20 }
 0x38e   :  { %825 = vrot.lane.b32.xlu1 %v3684_v59, %s3400_s20 }
 0x402   :  { %v657_v27 = vpop.xlane.xlu0 %656 }
 0x403   :  { %v661_v28 = vsub.f32 %v652_v19, %v657_v27 }
 0x405   :  { %v663_v29 = vmul.f32 1.442695, %v661_v28 }
 0x406   :  { %v660_v30 = vpop.xlane.xlu1 %659 }
 0x407   :  { %3149 = vpow2.f32 %v663_v29  ;;  %v662_v31 = vsub.f32 %v653_v25, %v660_v30 }
 0x409   :  { %v665_v32 = vmul.f32 1.442695, %v662_v31 }
 0x40a   :  { %v3092_v37 = vpop.permute.xlu1 %3091 }
 0x40b   :  { %3151 = vpow2.f32 %v665_v32  ;;  %v3094_v49 = vunpack.i.h.bf16 %v3092_v37  ;;  %v3093_v50 = vunpack.i.l.bf16 %v3092_v37 }
 0x40d   :  { %v3001_v51 = vpack.c.bf16 %v3094_v49, %v3093_v50 }
 0x40e   :  { %v826_v38 = vpop.permute.xlu1 %825 }
 0x411   :  { %v3150_v33 = vpop.eup %3149 }
 0x412   :  { %v667_v34 = vsel %vm654_vm4, %v3150_v33, 0.0 }
 0x413   :  { %668 = vadd.xlane.f32.xlu0 %v667_v34 }
 0x415   :  { %v3152_v35 = vpop.eup %3151 }
 0x416   :  { %v670_v36 = vsel %vm654_vm4, %v3152_v35, 0.0 }
 0x417   :  { %671 = vadd.xlane.f32.xlu1 %v670_v36 }
 0x428   :  { %907 = vrot.lane.b32.xlu1 %v3682_v58, %s3400_s20 }
 0x429   :  { %3086 = vrot.lane.b32.xlu0 %v3692_v2, %s3400_s20 }
 0x4a0   :  { %v669_v39 = vpop.xlane.xlu0 %668 }
 0x4a1   :  { %3153 = vrcp.f32 %v669_v39  ;;  %v488_v39 = vld [vmem:[#allocation10 + $0x8] sm:$0xff] }
 0x4a4   :  { %v672_v40 = vpop.xlane.xlu1 %671  ;;  %v3087_v41 = vpop.permute.xlu0 %3086 }
 0x4a5   :  { %3155 = vrcp.f32 %v672_v40  ;;  %v3089_v42 = vunpack.i.h.bf16 %v3087_v41  ;;  %v3088_v43 = vunpack.i.l.bf16 %v3087_v41 }
 0x4a7   :  { %v2997_v44 = vpack.c.bf16 %v3089_v42, %v3088_v43 }
 0x4a8   :  { %v908_v53 = vpop.permute.xlu1 %907 }
 0x4a9   :  { %2999 = vmatpush3.bf16.xpose.msk.msra.mxu0 %vm3688_vm3, %v2997_v44 }
 0x4aa   :  { %3004 = vmatprep.subr.bf16.mxu0 %v3397_v52 }
 0x4ab   :  { %v3154_v45 = vpop.eup %3153 }
 0x4ac   :  { %v675_v46 = vmul.f32 %v3154_v45, %v3150_v33 }
 0x4ae   :  { %677 = vst.msk [vmem:[#allocation14] sm:$0xff] %vm654_vm4, %v675_v46  ;;  %2815 = vmatmul.mubr.msk.f32.vlgmr.msra.gmra.mrb[8].mxu1 %vm654_vm4, %v675_v46  ;;  %v487_v46 = vld [vmem:[#allocation10] sm:$0xff] }
 0x4af   :  { %v3156_v47 = vpop.eup %3155  ;;  %2995 = vmatpush3.bf16.msra.mxu1 %v2994_v13  ;;  %2821 = vmatprep.mubr.msk.f32.mxu1 %vm3398_vm1, %v3399_v57 }
 0x4b0   :  { %v676_v48 = vmul.f32 %v3156_v47, %v3152_v35  ;;  %2829 = vmatmul.mubr.msk.f32.vlgmr.msra.gmra.mrb[6].mxu0 %vm491_vm2, %v826_v38  ;;  %3000 = vmatprep.subr.bf16.mxu1 %v3397_v52 }
 0x4b1   :  { %2842 = vmatprep.mubr.msk.f32.mxu0 %vm3398_vm1, %v3399_v57 }
 0x4b2   :  { %678 = vst.msk [vmem:[#allocation14 + $0x20] sm:$0xff] %vm654_vm4, %v676_v48  ;;  %2822 = vmatmul.mubr.msk.f32.vlgmr.msra.gmra.mrb[10].mxu1 %vm654_vm4, %v676_v48 }
 0x4b3   :  { %2835 = vmatprep.mubr.msk.f32.mxu1 %vm3398_vm1, %v3399_v57 }
 0x4b8   :  { %3003 = vmatpush3.bf16.xpose.msk.msra.mxu1 %vm3688_vm3, %v3001_v51 }
 0x4b9   :  { %3007 = vmatprep.subr.bf16.mxu1 %v3397_v52 }
 0x4bf   :  { %2836 = vmatmul.mubr.msk.f32.vlgmr.msra.gmra.mrb[12].mxu1 %vm491_vm2, %v908_v53 }
 0x4c0   :  { %2849 = vmatprep.mubr.msk.f32.mxu1 %vm3398_vm1, %v3399_v57 }
 0x581   :  { %v3754_v54 = vpop.f32.mrb[8].mxu1 }
 0x582   :  { %v2816_v55 = vpop.f32.mrb[9].mxu1 }
 0x583   :  { %v903_v56 = vpop.f32.mrb[6].mxu0 }
 0x584   :  { %v989_v60 = vmul.f32 0.35355338, %v903_v56  ;;  %v2830_v61 = vpop.f32.mrb[7].mxu0 }
 0x585   :  { %v3756_v63 = vpop.f32.mrb[10].mxu1 }
 0x586   :  { %v2823_v3 = vpop.f32.mrb[11].mxu1  ;;  %v991_v4 = vadd.f32 %v989_v60, %v3715_v16 }
 0x588   :  { %v993_v5 = vsel %vm654_vm4, %v991_v4, -inf }
 0x589   :  { %994 = vmax.xlane.f32.xlu0 %v993_v5 }
 0x592   :  { %v985_v7 = vpop.f32.mrb[12].mxu1 }
 0x593   :  { %v990_v8 = vmul.f32 0.35355338, %v985_v7  ;;  %v2837_v9 = vpop.f32.mrb[13].mxu1 }
 0x595   :  { %v992_v10 = vadd.f32 %v990_v8, %v3718_v21 }
 0x597   :  { %v996_v11 = vsel %vm654_vm4, %v992_v10, -inf }
 0x598   :  { %997 = vmax.xlane.f32.xlu1 %v996_v11 }
 0x5a9   :  { %3101 = vrot.lane.b32.xlu1 %v3713_v14, %s3400_s20 }
 0x5ad   :  { %3106 = vrot.lane.b32.xlu1 %v3692_v2, %s3401_s4 }
 0x5b1   :  { %3111 = vrot.lane.b32.xlu1 %v3697_v6, %s3401_s4 }
 0x5b5   :  { %1424 = vrot.lane.b32.xlu1 %v3682_v58, %s3401_s4 }
 0x616   :  { %v995_v13 = vpop.xlane.xlu0 %994 }
 0x617   :  { %v999_v15 = vsub.f32 %v991_v4, %v995_v13 }
 0x619   :  { %v1001_v17 = vmul.f32 1.442695, %v999_v15 }
 0x61b   :  { %3157 = vpow2.f32 %v1001_v17 }
 0x625   :  { %v3158_v18 = vpop.eup %3157  ;;  %v998_v19 = vpop.xlane.xlu1 %997 }
 0x626   :  { %v1000_v20 = vsub.f32 %v992_v10, %v998_v19  ;;  %v1005_v22 = vsel %vm654_vm4, %v3158_v18, 0.0 }
 0x627   :  { %1006 = vadd.xlane.f32.xlu0 %v1005_v22 }
 0x628   :  { %v1003_v23 = vmul.f32 1.442695, %v1000_v20 }
 0x629   :  { %v3102_v24 = vpop.permute.xlu1 %3101 }
 0x62a   :  { %3159 = vpow2.f32 %v1003_v23  ;;  %v3104_v25 = vunpack.i.h.bf16 %v3102_v24  ;;  %v3103_v26 = vunpack.i.l.bf16 %v3102_v24 }
 0x62c   :  { %v3008_v27 = vpack.c.bf16 %v3104_v25, %v3103_v26 }
 0x62d   :  { %v3107_v37 = vpop.permute.xlu1 %3106 }
 0x62e   :  { %3009 = vmatpush3.bf16.msra.mxu1 %v3008_v27  ;;  %v3109_v40 = vunpack.i.h.bf16 %v3107_v37  ;;  %v3108_v41 = vunpack.i.l.bf16 %v3107_v37 }
 0x62f   :  { %3010 = vmatprep.subr.bf16.mxu1 %v3397_v52 }
 0x630   :  { %v3011_v44 = vpack.c.bf16 %v3109_v40, %v3108_v41 }
 0x631   :  { %v3112_v50 = vpop.permute.xlu1 %3111 }
 0x632   :  { %v3114_v53 = vunpack.i.h.bf16 %v3112_v50  ;;  %v3113_v55 = vunpack.i.l.bf16 %v3112_v50 }
 0x634   :  { %v3160_v28 = vpop.eup %3159  ;;  %v3015_v56 = vpack.c.bf16 %v3114_v53, %v3113_v55 }
 0x635   :  { %v1008_v29 = vsel %vm654_vm4, %v3160_v28, 0.0  ;;  %v1425_v5 = vpop.permute.xlu1 %1424 }
 0x636   :  { %1009 = vadd.xlane.f32.xlu0 %v1008_v29 }
 0x64c   :  { %3096 = vrot.lane.b32.xlu0 %v3710_v12, %s3400_s20 }
 0x650   :  { %1342 = vrot.lane.b32.xlu0 %v3684_v59, %s3401_s4 }
 0x6b4   :  { %v1007_v30 = vpop.xlane.xlu0 %1006 }
 0x6b5   :  { %3161 = vrcp.f32 %v1007_v30 }
 0x6bf   :  { %v3162_v31 = vpop.eup %3161 }
 0x6c0   :  { %v1013_v32 = vmul.f32 %v3162_v31, %v3158_v18 }
 0x6c2   :  { %1016 = vst.msk [vmem:[#allocation14 + $0x8] sm:$0xff] %vm654_vm4, %v1013_v32 }
 0x6c3   :  { %v1010_v33 = vpop.xlane.xlu0 %1009 }
 0x6c4   :  { %3163 = vrcp.f32 %v1010_v33 }
 0x6c7   :  { %v3097_v34 = vpop.permute.xlu0 %3096 }
 0x6c8   :  { %v3099_v35 = vunpack.i.h.bf16 %v3097_v34  ;;  %v3098_v36 = vunpack.i.l.bf16 %v3097_v34 }
 0x6ca   :  { %v3005_v38 = vpack.c.bf16 %v3099_v35, %v3098_v36 }
 0x6cb   :  { %v1343_v45 = vpop.permute.xlu0 %1342 }
 0x6cc   :  { %3006 = vmatpush3.bf16.msra.mxu0 %v3005_v38 }
 0x6cd   :  { %2852 = vmatprep.subr.mxu0 %v488_v39 }
 0x6ce   :  { %v3164_v42 = vpop.eup %3163 }
 0x6cf   :  { %v1014_v43 = vmul.f32 %v3164_v42, %v3160_v28  ;;  %2843 = vmatmul.mubr.msk.f32.vlgmr.msra.gmra.mrb[8].mxu0 %vm654_vm4, %v1013_v32 }
 0x6d0   :  { %2853 = vmatpush3.msra.mxu0 %v488_v39 }
 0x6d1   :  { %1017 = vst.msk [vmem:[#allocation14 + $0x28] sm:$0xff] %vm654_vm4, %v1014_v43  ;;  %2850 = vmatmul.mubr.msk.f32.vlgmr.msra.gmra.mrb[14].mxu1 %vm654_vm4, %v1014_v43  ;;  %2857 = vmatprep.subr.mxu0 %v487_v46 }
 0x6d2   :  { %3013 = vmatpush3.bf16.xpose.msk.msra.mxu1 %vm3688_vm3, %v3011_v44  ;;  %2866 = vmatprep.mubr.msk.f32.mxu1 %vm3398_vm1, %v3399_v57 }
 0x6d3   :  { %3018 = vmatprep.subr.bf16.mxu1 %v3397_v52 }
 0x6d9   :  { %2867 = vmatmul.mubr.msk.f32.vlgmr.msra.gmra.mrb[16].mxu1 %vm491_vm2, %v1343_v45 }
 0x6da   :  { %2880 = vmatprep.mubr.msk.f32.mxu1 %vm3398_vm1, %v3399_v57 }
 0x7a2   :  { %v1095_v47 = vpop.f32.mrb[8].mxu0 }
 0x7a3   :  { %v2844_v48 = vpop.f32.mrb[9].mxu0  ;;  %2854 = vmatprep.mubr.msk.f32.mxu0 %vm491_vm2, %v1095_v47 }
 0x7a4   :  { %v1176_v49 = vpop.f32.mrb[14].mxu1 }
 0x7a5   :  { %v2851_v51 = vpop.f32.mrb[15].mxu1  ;;  %2855 = vmatmul.mubr.msk.f32.vlgmr.msra.gmra.mrb[10].mxu0 %vm491_vm2, %v1176_v49 }
 0x7a6   :  { %2858 = vmatpush3.msra.mxu0 %v487_v46  ;;  %2859 = vmatprep.mubr.msk.f32.mxu0 %vm491_vm2, %v3754_v54 }
 0x7a7   :  { %3014 = vmatprep.subr.bf16.mxu0 %v3397_v52 }
 0x7ac   :  { %v1420_v60 = vpop.f32.mrb[16].mxu1 }
 0x7ad   :  { %v1506_v61 = vmul.f32 0.35355338, %v1420_v60  ;;  %v2868_v3 = vpop.f32.mrb[17].mxu1  ;;  %2860 = vmatmul.mubr.msk.f32.vlgmr.msra.gmra.mrb[10].mxu0 %vm491_vm2, %v3756_v63 }
 0x7ae   :  { %3017 = vmatpush3.bf16.xpose.msk.msra.mxu0 %vm3688_vm3, %v3015_v56  ;;  %2873 = vmatprep.mubr.msk.f32.mxu0 %vm3398_vm1, %v3399_v57 }
 0x7af   :  { %v1508_v4 = vadd.f32 %v1506_v61, %v3715_v16 }
 0x7b1   :  { %v1510_v54 = vsel %vm654_vm4, %v1508_v4, -inf }
 0x7b2   :  { %1511 = vmax.xlane.f32.xlu0 %v1510_v54 }
 0x7b5   :  { %2874 = vmatmul.mubr.msk.f32.vlgmr.msra.gmra.mrb[12].mxu0 %vm491_vm2, %v1425_v5 }
 0x83f   :  { %v1512_v7 = vpop.xlane.xlu0 %1511 }
 0x840   :  { %v1516_v8 = vsub.f32 %v1508_v4, %v1512_v7 }
 0x842   :  { %v1518_v9 = vmul.f32 1.442695, %v1516_v8 }
 0x844   :  { %3165 = vpow2.f32 %v1518_v9 }
 0x84e   :  { %v3166_v10 = vpop.eup %3165 }
 0x84f   :  { %v1522_v63 = vsel %vm654_vm4, %v3166_v10, 0.0 }
 0x850   :  { %1523 = vadd.xlane.f32.xlu0 %v1522_v63 }
 0x888   :  { %v1502_v11 = vpop.f32.mrb[12].mxu0 }
 0x889   :  { %v1507_v13 = vmul.f32 0.35355338, %v1502_v11  ;;  %v2875_v15 = vpop.f32.mrb[13].mxu0 }
 0x88b   :  { %v1509_v17 = vadd.f32 %v1507_v13, %v3718_v21 }
 0x88d   :  { %v1513_v18 = vsel %vm654_vm4, %v1509_v17, -inf }
 0x88e   :  { %1514 = vmax.xlane.f32.xlu1 %v1513_v18 }
 0x89f   :  { %3121 = vrot.lane.b32.xlu1 %v3713_v14, %s3401_s4 }
 0x8a3   :  { %3126 = vrot.lane.b32.xlu1 %v3692_v2, %s3402_s21 }
 0x8a7   :  { %3131 = vrot.lane.b32.xlu1 %v3697_v6, %s3402_s21 }
 0x8ab   :  { %1858 = vrot.lane.b32.xlu1 %v3682_v58, %s3402_s21  ;;  %v489_v58 = vld [vmem:[#allocation10 + $0x10] sm:$0xff] }
 0x8ac   :  { %2890 = vmatprep.subr.mxu0 %v489_v58 }
 0x8ad   :  { %2891 = vmatpush3.msra.mxu0 %v489_v58 }
 0x8ae   :  { %3028 = vmatprep.subr.bf16.mxu0 %v3397_v52 }
 0x8dd   :  { %v1524_v19 = vpop.xlane.xlu0 %1523 }
 0x8de   :  { %3167 = vrcp.f32 %v1524_v19 }
 0x8e8   :  { %v3168_v20 = vpop.eup %3167 }
 0x8e9   :  { %v1530_v22 = vmul.f32 %v3168_v20, %v3166_v10 }
 0x8eb   :  { %1533 = vst.msk [vmem:[#allocation14 + $0x10] sm:$0xff] %vm654_vm4, %v1530_v22 }
 0x91b   :  { %v1515_v23 = vpop.xlane.xlu1 %1514 }
 0x91c   :  { %v1517_v24 = vsub.f32 %v1509_v17, %v1515_v23 }
 0x91e   :  { %v1520_v25 = vmul.f32 1.442695, %v1517_v24 }
 0x91f   :  { %v3122_v6 = vpop.permute.xlu1 %3121 }
 0x920   :  { %3169 = vpow2.f32 %v1520_v25  ;;  %v3124_v31 = vunpack.i.h.bf16 %v3122_v6  ;;  %v3123_v32 = vunpack.i.l.bf16 %v3122_v6 }
 0x922   :  { %v3022_v35 = vpack.c.bf16 %v3124_v31, %v3123_v32 }
 0x923   :  { %v3127_v36 = vpop.permute.xlu1 %3126 }
 0x924   :  { %v3129_v37 = vunpack.i.h.bf16 %v3127_v36  ;;  %v3128_v38 = vunpack.i.l.bf16 %v3127_v36 }
 0x926   :  { %v3025_v39 = vpack.c.bf16 %v3129_v37, %v3128_v38 }
 0x927   :  { %v3132_v41 = vpop.permute.xlu1 %3131 }
 0x928   :  { %v3134_v42 = vunpack.i.h.bf16 %v3132_v41  ;;  %v3133_v43 = vunpack.i.l.bf16 %v3132_v41 }
 0x92a   :  { %v3170_v26 = vpop.eup %3169  ;;  %v3029_v46 = vpack.c.bf16 %v3134_v42, %v3133_v43 }
 0x92b   :  { %v1525_v27 = vsel %vm654_vm4, %v3170_v26, 0.0  ;;  %v1859_v49 = vpop.permute.xlu1 %1858 }
 0x92c   :  { %1526 = vadd.xlane.f32.xlu0 %v1525_v27 }
 0x942   :  { %3116 = vrot.lane.b32.xlu0 %v3710_v12, %s3401_s4 }
 0x946   :  { %1776 = vrot.lane.b32.xlu0 %v3684_v59, %s3402_s21 }
 0x9b9   :  { %v1527_v2 = vpop.xlane.xlu0 %1526 }
 0x9ba   :  { %3171 = vrcp.f32 %v1527_v2 }
 0x9bd   :  { %v3117_v28 = vpop.permute.xlu0 %3116 }
 0x9be   :  { %v3119_v29 = vunpack.i.h.bf16 %v3117_v28  ;;  %v3118_v30 = vunpack.i.l.bf16 %v3117_v28  ;;  %v2650_v28 = vld [vmem:[%s3963_s8] ss:$0 sm:$0xff] }
 0x9c0   :  { %v3019_v33 = vpack.c.bf16 %v3119_v29, %v3118_v30 }
 0x9c1   :  { %v1777_v40 = vpop.permute.xlu0 %1776 }
 0x9c2   :  { %3020 = vmatpush3.bf16.msra.mxu1 %v3019_v33 }
 0x9c3   :  { %3021 = vmatprep.subr.bf16.mxu1 %v3397_v52 }
 0x9c4   :  { %v3172_v34 = vpop.eup %3171 }
 0x9c5   :  { %v1531_v59 = vmul.f32 %v3172_v34, %v3170_v26  ;;  %2881 = vmatmul.mubr.msk.f32.vlgmr.msra.gmra.mrb[18].mxu1 %vm654_vm4, %v1530_v22 }
 0x9c6   :  { %3023 = vmatpush3.bf16.msra.mxu1 %v3022_v35  ;;  %2887 = vmatprep.mubr.msk.f32.mxu1 %vm3398_vm1, %v3399_v57 }
 0x9c7   :  { %1534 = vst.msk [vmem:[#allocation14 + $0x30] sm:$0xff] %vm654_vm4, %v1531_v59  ;;  %3024 = vmatprep.subr.bf16.mxu1 %v3397_v52 }
 0x9c9   :  { %2888 = vmatmul.mubr.msk.f32.vlgmr.msra.gmra.mrb[20].mxu1 %vm654_vm4, %v1531_v59 }
 0x9ca   :  { %2899 = vmatprep.mubr.msk.f32.mxu1 %vm3398_vm1, %v3399_v57 }
 0x9cf   :  { %3027 = vmatpush3.bf16.xpose.msk.msra.mxu1 %vm3688_vm3, %v3025_v39 }
 0x9d0   :  { %3032 = vmatprep.subr.bf16.mxu1 %v3397_v52 }
 0x9d6   :  { %2900 = vmatmul.mubr.msk.f32.vlgmr.msra.gmra.mrb[22].mxu1 %vm491_vm2, %v1777_v40 }
 0x9d7   :  { %2913 = vmatprep.mubr.msk.f32.mxu1 %vm3398_vm1, %v3399_v57 }
 0xa98   :  { %v1610_v44 = vpop.f32.mrb[18].mxu1 }
 0xa99   :  { %v2882_v45 = vpop.f32.mrb[19].mxu1  ;;  %2892 = vmatprep.mubr.msk.f32.mxu0 %vm491_vm2, %v1610_v44  ;;  %v2265_v44 = vld [vmem:[#allocation11] sm:$0xff] }
 0xa9a   :  { %v2266_v45 = vld [vmem:[#allocation11 + $0x8] sm:$0xff] }
 0xa9c   :  { %v1689_v47 = vpop.f32.mrb[20].mxu1 }
 0xa9d   :  { %v2889_v48 = vpop.f32.mrb[21].mxu1  ;;  %2893 = vmatmul.mubr.msk.f32.vlgmr.msra.gmra.mrb[10].mxu0 %vm491_vm2, %v1689_v47  ;;  %v2267_v47 = vld [vmem:[#allocation11 + $0x10] sm:$0xff] }
 0xa9e   :  { %3031 = vmatpush3.bf16.xpose.msk.msra.mxu0 %vm3688_vm3, %v3029_v46  ;;  %2906 = vmatprep.mubr.msk.f32.mxu0 %vm3398_vm1, %v3399_v57  ;;  %v3038_v46 = vpack.c.bf16 %v2266_v45, %v2265_v44  ;;  %v2268_v48 = vld [vmem:[#allocation11 + $0x18] sm:$0xff] }
 0xa9f   :  { %3035 = vmatprep.subr.bf16.mxu0 %v3397_v52 }
 0xaa5   :  { %2907 = vmatmul.mubr.msk.f32.vlgmr.msra.gmra.mrb[14].mxu0 %vm491_vm2, %v1859_v49  ;;  %v3042_v49 = vpack.c.bf16 %v2268_v48, %v2267_v47 }
 0xaa6   :  { %2920 = vmatprep.mubr.msk.f32.mxu0 %vm3398_vm1, %v3399_v57 }
 0xaa9   :  { %v1854_v50 = vpop.f32.mrb[22].mxu1 }
 0xaaa   :  { %v1940_v51 = vmul.f32 0.35355338, %v1854_v50  ;;  %v2901_v53 = vpop.f32.mrb[23].mxu1 }
 0xaac   :  { %v1942_v55 = vadd.f32 %v1940_v51, %v3715_v16 }
 0xaae   :  { %v1944_v56 = vsel %vm654_vm4, %v1942_v55, -inf }
 0xaaf   :  { %1945 = vmax.xlane.f32.xlu0 %v1944_v56 }
 0xb3c   :  { %v1946_v62 = vpop.xlane.xlu0 %1945 }
 0xb3d   :  { %v1950_v60 = vsub.f32 %v1942_v55, %v1946_v62 }
 0xb3f   :  { %v1952_v61 = vmul.f32 1.442695, %v1950_v60 }
 0xb41   :  { %3173 = vpow2.f32 %v1952_v61  ;;  %v2651_v61 = vld [vmem:[%s3970_s15] ss:$0 sm:$0xff] }
 0xb4b   :  { %v3174_v3 = vpop.eup %3173 }
 0xb4c   :  { %v1956_v52 = vsel %vm654_vm4, %v3174_v3, 0.0 }
 0xb4d   :  { %1957 = vadd.xlane.f32.xlu0 %v1956_v52 }
 0xb78   :  { %v1936_v4 = vpop.f32.mrb[14].mxu0 }
 0xb79   :  { %v1941_v54 = vmul.f32 0.35355338, %v1936_v4  ;;  %v2908_v5 = vpop.f32.mrb[15].mxu0 }
 0xb7b   :  { %v1943_v57 = vadd.f32 %v1941_v54, %v3718_v21  ;;  %v2652_v54 = vld [vmem:[%s3971_s16] ss:$0 sm:$0xff] }
 0xb7d   :  { %v1947_v7 = vsel %vm654_vm4, %v1943_v57, -inf }
 0xb7e   :  { %1948 = vmax.xlane.f32.xlu1 %v1947_v7 }
 0xb8f   :  { %3141 = vrot.lane.b32.xlu1 %v3713_v14, %s3402_s21  ;;  %v490_v14 = vld [vmem:[#allocation10 + $0x18] sm:$0xff] }
 0xbda   :  { %v1958_v16 = vpop.xlane.xlu0 %1957 }
 0xbdb   :  { %3175 = vrcp.f32 %v1958_v16 }
 0xbe5   :  { %v3176_v8 = vpop.eup %3175 }
 0xbe6   :  { %v1964_v9 = vmul.f32 %v3176_v8, %v3174_v3  ;;  %v2409_v8 = vld [vmem:[%s3968_s13] sm:$0xff] }
 0xbe8   :  { %1967 = vst.msk [vmem:[#allocation14 + $0x18] sm:$0xff] %vm654_vm4, %v1964_v9 }
 0xc0b   :  { %v1949_v10 = vpop.xlane.xlu1 %1948 }
 0xc0c   :  { %v1951_v63 = vsub.f32 %v1943_v57, %v1949_v10 }
 0xc0e   :  { %v1954_v11 = vmul.f32 1.442695, %v1951_v63  ;;  %v2411_v63 = vld [vmem:[%s3968_s13 + $0x10] sm:$0xff] }
 0xc0f   :  { %v3142_v13 = vpop.permute.xlu1 %3141 }
 0xc10   :  { %3177 = vpow2.f32 %v1954_v11  ;;  %v3144_v15 = vunpack.i.h.bf16 %v3142_v13  ;;  %v3143_v17 = vunpack.i.l.bf16 %v3142_v13  ;;  %v2412_v11 = vld [vmem:[%s3968_s13 + $0x18] sm:$0xff] }
 0xc11   :  { %v3050_v13 = vpack.c.bf16 %v2412_v11, %v2411_v63 }
 0xc12   :  { %v3036_v21 = vpack.c.bf16 %v3144_v15, %v3143_v17  ;;  %v2413_v15 = vld [vmem:[%s3968_s13 + $0x20] sm:$0xff]  ;;  %v2414_v17 = vld [vmem:[%s3968_s13 + $0x28] sm:$0xff] }
 0xc14   :  { %3037 = vmatpush3.bf16.msra.mxu0 %v3036_v21  ;;  %v3054_v21 = vpack.c.bf16 %v2414_v17, %v2413_v15 }
 0xc15   :  { %2923 = vmatprep.subr.mxu0 %v490_v14 }
 0xc1a   :  { %v3178_v18 = vpop.eup %3177 }
 0xc1b   :  { %v1959_v19 = vsel %vm654_vm4, %v3178_v18, 0.0 }
 0xc1c   :  { %1960 = vadd.xlane.f32.xlu0 %v1959_v19  ;;  %v2416_v19 = vld [vmem:[%s3968_s13 + $0x38] sm:$0xff] }
 0xc32   :  { %3136 = vrot.lane.b32.xlu0 %v3710_v12, %s3402_s21 }
 0xca9   :  { %v1961_v20 = vpop.xlane.xlu0 %1960 }
 0xcaa   :  { %3179 = vrcp.f32 %v1961_v20  ;;  %v2653_v20 = vld [vmem:[%s3967_s12] ss:$0 sm:$0xff]  ;;  %s3404_s12 = smov [#allocation14]  }
 0xcad   :  { %v3137_v22 = vpop.permute.xlu0 %3136 }
 0xcae   :  { %v3139_v23 = vunpack.i.h.bf16 %v3137_v22  ;;  %v3138_v24 = vunpack.i.l.bf16 %v3137_v22 }
 0xcb0   :  { %v3033_v25 = vpack.c.bf16 %v3139_v23, %v3138_v24 }
 0xcb2   :  { %3034 = vmatpush3.bf16.msra.mxu1 %v3033_v25 }
 0xcb3   :  { %3039 = vmatprep.subr.bf16.mxu1 %v3038_v46 }
 0xcb4   :  { %v3180_v26 = vpop.eup %3179 }
 0xcb5   :  { %v1965_v27 = vmul.f32 %v3180_v26, %v3178_v18  ;;  %2914 = vmatmul.mubr.msk.f32.vlgmr.msra.gmra.mrb[24].mxu1 %vm654_vm4, %v1964_v9  ;;  %v2410_v9 = vld [vmem:[%s3968_s13 + $0x8] sm:$0xff]  ;;  %v2415_v18 = vld [vmem:[%s3968_s13 + $0x30] sm:$0xff]  ;;  %s2579_s13 = sshll.u32 %s3404_s12, 4  ;;  %s2580_s13 = int_to_ptr.vmem [resolvable:$true] %s2579_s13 }
 0xcb6   :  { %3041 = vmatpush3.bf16.msra.mxu1 %v3038_v46  ;;  %v3046_v10 = vpack.c.bf16 %v2410_v9, %v2409_v8  ;;  %s3333_s21 = scalar_lea.vmem %s2580_s13, 1024  ;;  %p3338_p7 = scmp.lt.s32.totalorder %s2580_s13, %s2580_s13 }
 0xcb7   :  { %1968 = vst.msk [vmem:[#allocation14 + $0x38] sm:$0xff] %vm654_vm4, %v1965_v27  ;;  %2921 = vmatmul.mubr.msk.f32.vlgmr.msra.gmra.mrb[16].mxu0 %vm654_vm4, %v1965_v27  ;;  %3043 = vmatprep.subr.bf16.mxu1 %v3042_v49  ;;  %p3334_p6 = scmp.ne.s32.totalorder %s2580_s13, %s3333_s21  ;;  %p3339_p8 = scmp.lt.s32.totalorder %s3333_s21, %s3333_s21 }
 0xcb8   :  { %2924 = vmatpush3.msra.mxu0 %v490_v14  ;;  %v3058_v14 = vpack.c.bf16 %v2416_v19, %v2415_v18 }
 0xcb9   :  { %3047 = vmatprep.subr.bf16.mxu0 %v3046_v10  ;;  %p3340_p9 = por %p3339_p8, %p3338_p7 }
 0xcba   :  { %3045 = vmatpush3.bf16.msra.mxu1 %v3042_v49 }
 0xcbb   :  { %p3341_p10 = pnand %p3340_p9, %p3334_p6 }
 0xd88   :  { %v2044_v58 = vpop.f32.mrb[24].mxu1 }
 0xd89   :  { %v2915_v12 = vpop.f32.mrb[25].mxu1  ;;  %2925 = vmatprep.mubr.msk.f32.mxu0 %vm491_vm2, %v2044_v58 }
 0xd8a   :  { %v2123_v2 = vpop.f32.mrb[16].mxu0 }
 0xd8b   :  { %v2922_v6 = vpop.f32.mrb[17].mxu0  ;;  %2926 = vmatmul.mubr.msk.f32.vlgmr.msra.gmra.mrb[10].mxu0 %vm491_vm2, %v2123_v2 }
 0xd8c   :  { %3049 = vmatpush3.bf16.msra.mxu0 %v3046_v10 }
 0xd8d   :  { %3051 = vmatprep.subr.bf16.mxu0 %v3050_v13 }
 0xd90   :  { %3053 = vmatpush3.bf16.msra.mxu0 %v3050_v13 }
 0xd91   :  { %3055 = vmatprep.subr.bf16.mxu0 %v3054_v21 }
 0xd94   :  { %3057 = vmatpush3.bf16.msra.mxu0 %v3054_v21 }
 0xd95   :  { %3059 = vmatprep.subr.bf16.mxu0 %v3058_v14 }
 0xd98   :  { %3061 = vmatpush3.bf16.msra.mxu0 %v3058_v14 }
 0xe5e   :  { %v2927_v29 = vpop.f32.mrb[10].mxu0 }
 0xe5f   :  { %v2218_v30 = vadd.f32 %v2927_v29, %v2650_v28  ;;  %v2199_v31 = vpop.f32.mrb[11].mxu0 }
 0xe60   :  { %v2217_v32 = vadd.f32 %v2650_v28, %v2199_v31 }
 0xe61   :  { %v3866_v33 = vadd.f32 %v2218_v30, %v3614_v1 }
 0xe62   :  { %v3869_v34 = vadd.f32 %v2217_v32, %v3612_v0 }
 0xe63   :  { %v2226_v35 = vsel %vm156_vm0, %v3866_v33, 0.0 }
 0xe64   :  { %2227 = vadd.xlane.f32.xlu0 %v2226_v35  ;;  %v2223_v59 = vsel %vm156_vm0, %v3869_v34, 0.0 }
 0xe65   :  { %2224 = vadd.xlane.f32.xlu1 %v2223_v59 }
 0xef1   :  { %v2228_v36 = vpop.xlane.xlu0 %2227 }
 0xef2   :  { %v2230_v37 = vmul.f32 0.03125, %v2228_v36  ;;  %v2225_v38 = vpop.xlane.xlu1 %2224 }
 0xef3   :  { %v2229_v39 = vmul.f32 0.03125, %v2225_v38 }
 0xef4   :  { %v2232_v40 = vsub.f32 %v3866_v33, %v2230_v37 }
 0xef5   :  { %v2231_v1 = vsub.f32 %v3869_v34, %v2229_v39 }
 0xef6   :  { %v2234_v41 = vmul.f32 %v2232_v40, %v2232_v40 }
 0xef7   :  { %v2233_v42 = vmul.f32 %v2231_v1, %v2231_v1 }
 0xef8   :  { %v2238_v0 = vsel %vm156_vm0, %v2234_v41, 0.0 }
 0xef9   :  { %2239 = vadd.xlane.f32.xlu1 %v2238_v0  ;;  %v2235_v43 = vsel %vm156_vm0, %v2233_v42, 0.0 }
 0xefa   :  { %2236 = vadd.xlane.f32.xlu0 %v2235_v43 }
 0xf86   :  { %v2240_v50 = vpop.xlane.xlu1 %2239 }
 0xf87   :  { %v2242_v51 = vmul.f32 0.03125, %v2240_v50  ;;  %v2237_v53 = vpop.xlane.xlu0 %2236 }
 0xf88   :  { %v2241_v55 = vmul.f32 0.03125, %v2237_v53 }
 0xf89   :  { %v2244_v56 = vadd.f32 1e-06, %v2242_v51 }
 0xf8a   :  { %v2243_v62 = vadd.f32 1e-06, %v2241_v55 }
 0xf8b   :  { %3181 = vrsqrt.f32 %v2244_v56 }
 0xf8c   :  { %3183 = vrsqrt.f32 %v2243_v62 }
 0xf95   :  { %v3182_v60 = vpop.eup %3181 }
 0xf96   :  { %v3184_v3 = vpop.eup %3183  ;;  %v2248_v52 = vmul.f32 %v3182_v60, %v2232_v40 }
 0xf97   :  { %v2247_v4 = vmul.f32 %v3184_v3, %v2231_v1 }
 0xf98   :  { %v2256_v5 = vmul.f32 %v2651_v61, %v2248_v52 }
 0xf99   :  { %v2255_v57 = vmul.f32 %v2651_v61, %v2247_v4  ;;  %v3403_v4 = vmov -1.0  }
 0xf9a   :  { %v2264_v16 = vadd.f32 %v2652_v54, %v2256_v5 }
 0xf9b   :  { %v2263_v7 = vadd.f32 %v2652_v54, %v2255_v57 }
 0xf9d   :  { %2936 = vmatprep.mubr.msk.f32.mxu1 %vm156_vm0, %v2263_v7 }
 0xf9e   :  { %2937 = vmatmul.mubr.msk.f32.vlgmr.msra.gmra.mrb[26].mxu1 %vm156_vm0, %v2264_v16 }
0x1071   :  { %v2938_v22 = vpop.f32.mrb[26].mxu1 }
0x1072   :  { %v2354_v23 = vadd.f32 %v2938_v22, %v2653_v20  ;;  %v2348_v24 = vpop.f32.mrb[27].mxu1 }
0x1073   :  { %v2349_v25 = vadd.f32 %v2653_v20, %v2348_v24 }
0x1074   :  { %v2360_v26 = vmul.f32 0.70710677, %v2354_v23  ;;  %v2358_v63 = vmul.f32 0.5, %v2354_v23 }
0x1075   :  { %v2359_v27 = vmul.f32 0.70710677, %v2349_v25  ;;  %v2357_v9 = vmul.f32 0.5, %v2349_v25 }
0x1076   :  { %v2366_v58 = vand.u32 2147483647, %v2360_v26  ;;  %vm2362_vm5 = vcmp.ge.f32.partialorder %v2360_v26, 0.0 }
0x1077   :  { %v2365_v12 = vand.u32 2147483647, %v2359_v27  ;;  %vm2361_vm6 = vcmp.ge.f32.partialorder %v2359_v27, 0.0  ;;  %v2364_v54 = vsel %vm2362_vm5, 1.0, %v3403_v4 }
0x1078   :  { %v2368_v2 = vmul.f32 0.3275911, %v2366_v58  ;;  %v2392_v30 = vsub.f32 0.0, %v2366_v58  ;;  %v2363_v7 = vsel %vm2361_vm6, 1.0, %v3403_v4 }
0x1079   :  { %v2367_v6 = vmul.f32 0.3275911, %v2365_v12  ;;  %v2391_v31 = vsub.f32 0.0, %v2365_v12 }
0x107a   :  { %v2370_v28 = vadd.f32 1.0, %v2368_v2  ;;  %v2394_v35 = vmul.f32 %v2392_v30, %v2366_v58 }
0x107b   :  { %v2369_v29 = vadd.f32 1.0, %v2367_v6  ;;  %v2393_v37 = vmul.f32 %v2391_v31, %v2365_v12 }
0x107c   :  { %3185 = vrcp.f32 %v2370_v28  ;;  %v2397_v40 = vmul.f32 1.442695, %v2394_v35 }
0x107d   :  { %3187 = vrcp.f32 %v2369_v29  ;;  %v2395_v42 = vmul.f32 1.442695, %v2393_v37 }
0x107e   :  { %3189 = vpow2.f32 %v2397_v40 }
0x107f   :  { %3191 = vpow2.f32 %v2395_v42 }
0x1086   :  { %v3186_v32 = vpop.eup %3185 }
0x1087   :  { %v3188_v59 = vpop.eup %3187  ;;  %v2374_v36 = vmul.f32 1.0614054, %v3186_v32 }
0x1088   :  { %v2373_v38 = vmul.f32 1.0614054, %v3188_v59  ;;  %v3190_v56 = vpop.eup %3189 }
0x1089   :  { %v2376_v39 = vadd.f32 -1.4531521, %v2374_v36  ;;  %v3192_v60 = vpop.eup %3191 }
0x108a   :  { %v2375_v1 = vadd.f32 -1.4531521, %v2373_v38 }
0x108b   :  { %v2378_v41 = vmul.f32 %v3186_v32, %v2376_v39 }
0x108c   :  { %v2377_v0 = vmul.f32 %v3188_v59, %v2375_v1 }
0x108d   :  { %v2380_v43 = vadd.f32 1.4214138, %v2378_v41 }
0x108e   :  { %v2379_v44 = vadd.f32 1.4214138, %v2377_v0 }
0x108f   :  { %v2382_v45 = vmul.f32 %v3186_v32, %v2380_v43 }
0x1090   :  { %v2381_v46 = vmul.f32 %v3188_v59, %v2379_v44 }
0x1091   :  { %v2384_v47 = vadd.f32 -0.28449672, %v2382_v45 }
0x1092   :  { %v2383_v48 = vadd.f32 -0.28449672, %v2381_v46 }
0x1093   :  { %v2386_v49 = vmul.f32 %v3186_v32, %v2384_v47 }
0x1094   :  { %v2385_v50 = vmul.f32 %v3188_v59, %v2383_v48 }
0x1095   :  { %v2388_v51 = vadd.f32 0.2548296, %v2386_v49 }
0x1096   :  { %v2387_v53 = vadd.f32 0.2548296, %v2385_v50 }
0x1097   :  { %v2390_v55 = vmul.f32 %v3186_v32, %v2388_v51 }
0x1098   :  { %v2389_v62 = vmul.f32 %v3188_v59, %v2387_v53 }
0x1099   :  { %v2400_v61 = vmul.f32 %v3190_v56, %v2390_v55 }
0x109a   :  { %v2399_v3 = vmul.f32 %v3192_v60, %v2389_v62 }
0x109b   :  { %v2402_v52 = vsub.f32 1.0, %v2400_v61 }
0x109c   :  { %v2401_v5 = vsub.f32 1.0, %v2399_v3 }
0x109d   :  { %v2404_v57 = vmul.f32 %v2402_v52, %v2364_v54 }
0x109e   :  { %v2403_v16 = vmul.f32 %v2401_v5, %v2363_v7 }
0x109f   :  { %v2406_v8 = vadd.f32 1.0, %v2404_v57 }
0x10a0   :  { %v2405_v10 = vadd.f32 1.0, %v2403_v16 }
0x10a1   :  { %v2408_v13 = vmul.f32 %v2406_v8, %v2358_v63 }
0x10a2   :  { %v2407_v11 = vmul.f32 %v2405_v10, %v2357_v9 }
0x10a4   :  { %2955 = vmatprep.mubr.msk.f32.mxu0 %vm2424_vm7, %v2407_v11 }
0x10a5   :  { %2956 = vmatmul.mubr.msk.f32.vlgmr.msra.gmra.mrb[18].mxu0 %vm2424_vm7, %v2408_v13 }
0x10a6   :  { %3344 = shalt.err (!%p3341_p10)
}
0x10a7   :  { %s3345_s8 = scalar_lea.hbm %s3973_s18, 1024 }
0x10a8   :  { %p3346_p11 = scmp.ne.s32.totalorder %s3973_s18, %s3345_s8  ;;  %p3349_p12 = scmp.lt.u32.totalorder %s3345_s8, %s3973_s18 }
0x10aa   :  { %p3351_p13 = pnand %p3349_p12, %p3346_p11 }
0x10ac   :  { %3354 = shalt.err (!%p3351_p13)
}
0x10ad   :  { %2585 = dma.vmem_to_hbm [thread:$0]  %s2580_s13, 1024, %s3973_s18, [#allocation15], %s3391_s24, %s3391_s24, %s3392_s25  }
0x10ae   :  { %v2656_v15 = vld [vmem:[%s3969_s14] ss:$0 sm:$0xff]  ;;  %s3405_s14 = smov [#allocation13]  }
0x10af   :  { %s2567_s18 = sshll.u32 %s3405_s14, 4  ;;  %s2568_s18 = int_to_ptr.vmem [resolvable:$true] %s2567_s18 }
0x10b0   :  { %s3355_s23 = scalar_lea.vmem %s2568_s18, 256  ;;  %p3360_p1 = scmp.lt.s32.totalorder %s2568_s18, %s2568_s18 }
0x10b1   :  { %p3356_p0 = scmp.ne.s32.totalorder %s2568_s18, %s3355_s23  ;;  %p3361_p2 = scmp.lt.s32.totalorder %s3355_s23, %s3355_s23 }
0x10b3   :  { %p3362_p3 = por %p3361_p2, %p3360_p1 }
0x10b5   :  { %p3363_p4 = pnand %p3362_p3, %p3356_p0 }
0x1178   :  { %v2957_v17 = vpop.f32.mrb[18].mxu0 }
0x1179   :  { %v2503_v21 = vadd.f32 %v2957_v17, %v2656_v15  ;;  %v2497_v18 = vpop.f32.mrb[19].mxu0 }
0x117a   :  { %v2498_v19 = vadd.f32 %v2656_v15, %v2497_v18 }
0x117b   :  { %v2509_v14 = vmul.f32 0.70710677, %v2503_v21  ;;  %v2507_v52 = vmul.f32 0.5, %v2503_v21 }
0x117c   :  { %v2508_v20 = vmul.f32 0.70710677, %v2498_v19  ;;  %v2506_v5 = vmul.f32 0.5, %v2498_v19 }
0x117d   :  { %v2515_v22 = vand.u32 2147483647, %v2509_v14  ;;  %vm2511_vm8 = vcmp.ge.f32.partialorder %v2509_v14, 0.0 }
0x117e   :  { %v2514_v23 = vand.u32 2147483647, %v2508_v20  ;;  %vm2510_vm9 = vcmp.ge.f32.partialorder %v2508_v20, 0.0  ;;  %v2513_v56 = vsel %vm2511_vm8, 1.0, %v3403_v4 }
0x117f   :  { %v2517_v24 = vmul.f32 0.3275911, %v2515_v22  ;;  %v2541_v58 = vsub.f32 0.0, %v2515_v22  ;;  %v2512_v61 = vsel %vm2510_vm9, 1.0, %v3403_v4 }
0x1180   :  { %v2516_v25 = vmul.f32 0.3275911, %v2514_v23  ;;  %v2540_v12 = vsub.f32 0.0, %v2514_v23 }
0x1181   :  { %v2519_v26 = vadd.f32 1.0, %v2517_v24  ;;  %v2543_v6 = vmul.f32 %v2541_v58, %v2515_v22 }
0x1182   :  { %v2518_v27 = vadd.f32 1.0, %v2516_v25  ;;  %v2542_v30 = vmul.f32 %v2540_v12, %v2514_v23 }
0x1183   :  { %3193 = vrcp.f32 %v2519_v26  ;;  %v2546_v35 = vmul.f32 1.442695, %v2543_v6 }
0x1184   :  { %3195 = vrcp.f32 %v2518_v27  ;;  %v2544_v37 = vmul.f32 1.442695, %v2542_v30 }
0x1185   :  { %3197 = vpow2.f32 %v2546_v35 }
0x1186   :  { %3199 = vpow2.f32 %v2544_v37 }
0x118d   :  { %v3194_v2 = vpop.eup %3193 }
0x118e   :  { %v3196_v28 = vpop.eup %3195  ;;  %v2523_v29 = vmul.f32 1.0614054, %v3194_v2 }
0x118f   :  { %v2522_v31 = vmul.f32 1.0614054, %v3196_v28  ;;  %v3198_v48 = vpop.eup %3197 }
0x1190   :  { %v2525_v32 = vadd.f32 -1.4531521, %v2523_v29  ;;  %v3200_v50 = vpop.eup %3199 }
0x1191   :  { %v2524_v59 = vadd.f32 -1.4531521, %v2522_v31 }
0x1192   :  { %v2527_v36 = vmul.f32 %v3194_v2, %v2525_v32 }
0x1193   :  { %v2526_v38 = vmul.f32 %v3196_v28, %v2524_v59 }
0x1194   :  { %v2529_v39 = vadd.f32 1.4214138, %v2527_v36 }
0x1195   :  { %v2528_v40 = vadd.f32 1.4214138, %v2526_v38 }
0x1196   :  { %v2531_v1 = vmul.f32 %v3194_v2, %v2529_v39 }
0x1197   :  { %v2530_v41 = vmul.f32 %v3196_v28, %v2528_v40 }
0x1198   :  { %v2533_v42 = vadd.f32 -0.28449672, %v2531_v1 }
0x1199   :  { %v2532_v0 = vadd.f32 -0.28449672, %v2530_v41 }
0x119a   :  { %v2535_v43 = vmul.f32 %v3194_v2, %v2533_v42 }
0x119b   :  { %v2534_v44 = vmul.f32 %v3196_v28, %v2532_v0 }
0x119c   :  { %v2537_v45 = vadd.f32 0.2548296, %v2535_v43 }
0x119d   :  { %v2536_v46 = vadd.f32 0.2548296, %v2534_v44 }
0x119e   :  { %v2539_v47 = vmul.f32 %v3194_v2, %v2537_v45 }
0x119f   :  { %v2538_v49 = vmul.f32 %v3196_v28, %v2536_v46 }
0x11a0   :  { %v2549_v51 = vmul.f32 %v3198_v48, %v2539_v47 }
0x11a1   :  { %v2548_v53 = vmul.f32 %v3200_v50, %v2538_v49 }
0x11a2   :  { %v2551_v55 = vsub.f32 1.0, %v2549_v51 }
0x11a3   :  { %v2550_v62 = vsub.f32 1.0, %v2548_v53 }
0x11a4   :  { %v2553_v60 = vmul.f32 %v2551_v55, %v2513_v56 }
0x11a5   :  { %v2552_v3 = vmul.f32 %v2550_v62, %v2512_v61 }
0x11a6   :  { %v2555_v54 = vadd.f32 1.0, %v2553_v60 }
0x11a7   :  { %v2554_v57 = vadd.f32 1.0, %v2552_v3 }
0x11a8   :  { %v2557_v7 = vmul.f32 %v2555_v54, %v2507_v52 }
0x11a9   :  { %v2556_v16 = vmul.f32 %v2554_v57, %v2506_v5 }
0x11aa   :  { %v2559_v8 = vadd.f32 %v2557_v7, %v3866_v33 }
0x11ab   :  { %v2558_v9 = vadd.f32 %v2556_v16, %v3869_v34 }
0x11ac   :  { %2561 = vst.msk [vmem:[#allocation13 + $0x8] sm:$0xff] %vm156_vm0, %v2559_v8 }
0x11ad   :  { %2560 = vst.msk [vmem:[#allocation13] sm:$0xff] %vm156_vm0, %v2558_v9 }
0x11ae   :  { %3366 = shalt.err (!%p3363_p4)
}
0x11af   :  { %s3987_s11 = sld [smem:[#allocation25_spill]] }
0x11b5   :  { %s3367_s30 = scalar_lea.hbm %s3987_s11, 256 }
0x11b6   :  { %p3368_p5 = scmp.ne.s32.totalorder %s3987_s11, %s3367_s30  ;;  %p3371_p6 = scmp.lt.u32.totalorder %s3367_s30, %s3987_s11 }
0x11b8   :  { %p3373_p7 = pnand %p3371_p6, %p3368_p5 }
0x11ba   :  { %3376 = shalt.err (!%p3373_p7)
}
0x11bb   :  { %2573 = dma.vmem_to_hbm [thread:$0]  %s2568_s18, 256, %s3987_s11, [#allocation4], %s3391_s24, %s3391_s24, %s3392_s25  }
0x11bc   :  { %3385 = dma.done.wait [#allocation4], 256  }
0x11bd   :  { %3386 = vsyncadd [#allocation4], 4294967040 }
0x11be   :  { %3387 = dma.done.wait [#allocation15], 1024  }
0x11bf   :  { %3388 = vsyncadd [#allocation15], 4294966272 }
0x11c0   :  { %2592 = vsyncpa [#allocation3], 1 }
0x11c1   :  { %2593 = vsyncpa [#allocation6], 1 }
0x11c2   :  { %2594 = vsyncpa [#allocation9], 1 }
0x11c3   :  { %2595 = vsyncpa [#allocation12], 1 }
0x11c4   :  { %2596 = vsyncpa [#allocation4], 1 }
0x11c5   :  { %2597 = vsyncpa [#allocation15], 1 }

</bundles_post_ra>
